<compile_context>
chip_gen: v6e
topology: v6e:2x2x1
jax: 0.10.0
libtpu: 0.0.40
codegen_flags: <defaults>
</compile_context>

<pallas_src>
import functools

import jax
import jax.numpy as jnp
from jax import lax
from jax.experimental import pallas as pl
from jax.experimental.pallas import tpu as pltpu


def _round_up(x, m):
    return (x + m - 1) // m * m


_MASK_VALUE = -1e30  # large finite "-inf" for softmax masking of padded T2 cols


# ----------------------------------------------------------------------------
# Pallas kernel
# ----------------------------------------------------------------------------
def alignment_kernel(q_ref, k_ref,
                     wq1_ref, bq1_ref, wq2_ref, bq2_ref, wq3_ref, bq3_ref,
                     wk1_ref, bk1_ref, wk2_ref, bk2_ref,
                     attn_ref, logp_ref,
                     qenc_ref, qsq_ref, kenc_ref, ksq_ref,
                     *, temperature, t2_valid):
    i = pl.program_id(1)              # T1-tile index
    tm, t2p = attn_ref.shape          # (tile rows, padded T2)

    # ---------------- encode whole utterance once per batch element ----------
    @pl.when(i == 0)
    def _encode():
        # query_proj: conv3 -> ReLU -> conv1 -> ReLU -> conv1   (layout (T1, C))
        x = q_ref[...]                                    # (T1p, C1p)
        t1p = x.shape[0]
        row = lax.broadcasted_iota(jnp.int32, x.shape, 0)
        xm = jnp.where(row >= 1, pltpu.roll(x, shift=1, axis=0), 0.0)              # x[t-1]
        xp = jnp.where(row <= t1p - 2, pltpu.roll(x, shift=t1p - 1, axis=0), 0.0)  # x[t+1]
        xcat = jnp.concatenate([xm, x, xp], axis=1)       # (T1p, 3*C1p) -> one wide-K matmul
        h = jnp.dot(xcat, wq1_ref[...], preferred_element_type=jnp.float32) + bq1_ref[...]
        h = jnp.maximum(h, 0.0)
        h = jnp.dot(h, wq2_ref[...], preferred_element_type=jnp.float32) + bq2_ref[...]
        h = jnp.maximum(h, 0.0)
        qe = jnp.dot(h, wq3_ref[...], preferred_element_type=jnp.float32) + bq3_ref[...]
        qsq_ref[...] = jnp.sum(qe * qe, axis=1, keepdims=True)      # (T1p, 1) f32
        qenc_ref[...] = qe.astype(qenc_ref.dtype)                   # (T1p, A) bf16

        # key_proj: conv3 -> ReLU -> conv1   (native layout (C, T2), weights on LHS)
        y = k_ref[...]                                    # (C2p, T2p)
        t2p_full = y.shape[1]
        col = lax.broadcasted_iota(jnp.int32, y.shape, 1)
        ym = jnp.where(col >= 1, pltpu.roll(y, shift=1, axis=1), 0.0)                       # y[:, t-1]
        yp = jnp.where(col <= t2p_full - 2, pltpu.roll(y, shift=t2p_full - 1, axis=1), 0.0)  # y[:, t+1]
        ycat = jnp.concatenate([ym, y, yp], axis=0)       # (3*C2p, T2p)
        g = jnp.dot(wk1_ref[...], ycat, preferred_element_type=jnp.float32) + bk1_ref[...]
        g = jnp.maximum(g, 0.0)
        ke = jnp.dot(wk2_ref[...], g, preferred_element_type=jnp.float32) + bk2_ref[...]
        ksq_ref[...] = jnp.sum(ke * ke, axis=0, keepdims=True)      # (1, T2p) f32
        kenc_ref[...] = ke.astype(kenc_ref.dtype)                   # (A, T2p) bf16

    # ---------------- per-T1-tile distance + softmax --------------------------
    start = pl.multiple_of(i * tm, tm)
    q_tile = qenc_ref[pl.ds(start, tm), :]                          # (tm, A) bf16
    qk = jnp.dot(q_tile, kenc_ref[...], preferred_element_type=jnp.float32)  # (tm, T2p)
    dist = qsq_ref[pl.ds(start, tm), :] + ksq_ref[...] - 2.0 * qk
    dist = jnp.maximum(dist, 0.0)                                   # match >=0 of the ref
    scores = (-temperature) * dist
    logp_ref[...] = scores                                          # attn_logprob (f32)

    if t2_valid < t2p:   # mask padded T2 columns before the softmax reductions
        col = lax.broadcasted_iota(jnp.int32, scores.shape, 1)
        scores = jnp.where(col < t2_valid, scores, _MASK_VALUE)
    m = jnp.max(scores, axis=1, keepdims=True)
    e = jnp.exp(scores - m)
    denom = jnp.sum(e, axis=1, keepdims=True)
    attn_ref[...] = (e * pl.reciprocal(denom, approx=True)).astype(attn_ref.dtype)


# ----------------------------------------------------------------------------
# Wrapper
# ----------------------------------------------------------------------------
def alignment_encoder(queries, keys, params, temperature, *,
                      attn_dtype=jnp.bfloat16, t1_tile=512):
    """queries: (B, C_mel, T1), keys: (B, C_text, T2)  (PyTorch layout).

    Returns (attn, attn_logprob), shapes (B, 1, T1, T2); attn is `attn_dtype`.
    """
    B, C1, T1 = queries.shape
    _, C2, T2 = keys.shape

    C1p = _round_up(C1, 128)          # mel channels, lane-dense
    C2p = _round_up(C2, 8)            # text channels live on sublanes
    T2p = _round_up(T2, 128)          # lane-dense output last dim
    Ap = params['bq3'].shape[1]       # padded attention dim (multiple of 128)

    tm = min(t1_tile, _round_up(T1, 8))
    T1p = _round_up(T1, tm)
    n_tiles = T1p // tm

    # queries -> (B, T1p, C1p): time on sublanes, channels lane-dense
    q_t = jnp.transpose(queries, (0, 2, 1)).astype(jnp.float32)
    q_t = jnp.pad(q_t, ((0, 0), (0, T1p - T1), (0, C1p - C1)))
    # keys stay in native (B, C, T2) layout; just zero-pad
    k_t = jnp.pad(keys.astype(jnp.float32), ((0, 0), (0, C2p - C2), (0, T2p - T2)))

    weight_args = (params['wq1'], params['bq1'], params['wq2'], params['bq2'],
                   params['wq3'], params['bq3'],
                   params['wk1'], params['bk1'], params['wk2'], params['bk2'])

    def full_spec(arr):
        return pl.BlockSpec(arr.shape, lambda b, i, _n=arr.ndim: (0,) * _n)

    kernel = functools.partial(alignment_kernel,
                               temperature=float(temperature), t2_valid=T2)

    attn, logp = pl.pallas_call(
        kernel,
        out_shape=(jax.ShapeDtypeStruct((B, T1p, T2p), attn_dtype),
                   jax.ShapeDtypeStruct((B, T1p, T2p), jnp.float32)),
        grid_spec=pltpu.PrefetchScalarGridSpec(
            num_scalar_prefetch=0,
            grid=(B, n_tiles),
            in_specs=[pl.BlockSpec((None, T1p, C1p), lambda b, i: (b, 0, 0)),
                      pl.BlockSpec((None, C2p, T2p), lambda b, i: (b, 0, 0))]
                     + [full_spec(w) for w in weight_args],
            out_specs=[pl.BlockSpec((None, tm, T2p), lambda b, i: (b, i, 0)),
                       pl.BlockSpec((None, tm, T2p), lambda b, i: (b, i, 0))],
            scratch_shapes=[pltpu.VMEM((T1p, Ap), jnp.bfloat16),   # q_enc
                            pltpu.VMEM((T1p, 1), jnp.float32),     # |q|^2
                            pltpu.VMEM((Ap, T2p), jnp.bfloat16),   # k_enc
                            pltpu.VMEM((1, T2p), jnp.float32)]),   # |k|^2
        compiler_params=pltpu.CompilerParams(
            dimension_semantics=("parallel", "arbitrary"),
            vmem_limit_bytes=32 * 1024 * 1024),
    )(q_t, k_t, *weight_args)

    attn = attn[:, :T1, :T2][:, None, :, :]
    logp = logp[:, :T1, :T2][:, None, :, :]
    return attn, logp


# ----------------------------------------------------------------------------
# Deterministic parameter construction (xavier-uniform like ConvNorm)
# ----------------------------------------------------------------------------
def _xavier_conv1d(key, cout, cin, k, gain):
    fan_in, fan_out = cin * k, cout * k
    bound = gain * (6.0 / (fan_in + fan_out)) ** 0.5
    kw, kb = jax.random.split(key)
    w = jax.random.uniform(kw, (cout, cin, k), jnp.float32, -bound, bound)
    b_bound = 1.0 / (fan_in ** 0.5)
    b = jax.random.uniform(kb, (cout,), jnp.float32, -b_bound, b_bound)
    return w, b


def make_params(key, n_mel, n_text, n_att):
    relu_gain = 2.0 ** 0.5
    ks = jax.random.split(key, 5)
    # torch-layout conv weights (Cout, Cin, K)
    wq1, bq1 = _xavier_conv1d(ks[0], 2 * n_mel, n_mel, 3, relu_gain)
    wq2, bq2 = _xavier_conv1d(ks[1], n_mel, 2 * n_mel, 1, 1.0)
    wq3, bq3 = _xavier_conv1d(ks[2], n_att, n_mel, 1, 1.0)
    wk1, bk1 = _xavier_conv1d(ks[3], 2 * n_text, n_text, 3, relu_gain)
    wk2, bk2 = _xavier_conv1d(ks[4], n_att, 2 * n_text, 1, 1.0)

    torch_params = dict(wq1=wq1, bq1=bq1, wq2=wq2, bq2=bq2, wq3=wq3, bq3=bq3,
                        wk1=wk1, bk1=bk1, wk2=wk2, bk2=bk2)

    # padded kernel-layout params
    C1p = _round_up(n_mel, 128)
    H1p = _round_up(2 * n_mel, 128)
    H2p = _round_up(n_mel, 128)
    Ap = _round_up(n_att, 128)
    C2p = _round_up(n_text, 8)
    G1p = _round_up(2 * n_text, 8)

    # query path (right-multiply, layout (T, C)); conv3 fused -> (3*C1p, H1p)
    wq1_p = jnp.zeros((3, C1p, H1p), jnp.float32)
    wq1_p = wq1_p.at[:, :n_mel, :2 * n_mel].set(jnp.transpose(wq1, (2, 1, 0)))
    wq1_flat = wq1_p.reshape(3 * C1p, H1p)
    bq1_p = jnp.zeros((1, H1p), jnp.float32).at[0, :2 * n_mel].set(bq1)

    wq2_p = jnp.zeros((H1p, H2p), jnp.float32).at[:2 * n_mel, :n_mel].set(
        jnp.transpose(wq2[:, :, 0], (1, 0)))
    bq2_p = jnp.zeros((1, H2p), jnp.float32).at[0, :n_mel].set(bq2)

    wq3_p = jnp.zeros((H2p, Ap), jnp.float32).at[:n_mel, :n_att].set(
        jnp.transpose(wq3[:, :, 0], (1, 0)))
    bq3_p = jnp.zeros((1, Ap), jnp.float32).at[0, :n_att].set(bq3)

    # key path (left-multiply, layout (C, T)); conv3 fused -> (G1p, 3*C2p)
    wk1_p = jnp.zeros((G1p, 3, C2p), jnp.float32)
    wk1_p = wk1_p.at[:2 * n_text, :, :n_text].set(jnp.transpose(wk1, (0, 2, 1)))
    wk1_flat = wk1_p.reshape(G1p, 3 * C2p)
    bk1_p = jnp.zeros((G1p, 1), jnp.float32).at[:2 * n_text, 0].set(bk1)

    wk2_p = jnp.zeros((Ap, G1p), jnp.float32).at[:n_att, :2 * n_text].set(wk2[:, :, 0])
    bk2_p = jnp.zeros((Ap, 1), jnp.float32).at[:n_att, 0].set(bk2)

    kernel_params = dict(wq1=wq1_flat, bq1=bq1_p, wq2=wq2_p, bq2=bq2_p,
                         wq3=wq3_p, bq3=bq3_p,
                         wk1=wk1_flat, bk1=bk1_p, wk2=wk2_p, bk2=bk2_p)
    return kernel_params, torch_params


# ----------------------------------------------------------------------------
# Pure-JAX reference (mirrors the PyTorch forward exactly)
# ----------------------------------------------------------------------------
def _conv1d_ref(x, w, b, pad):
    out = lax.conv_general_dilated(x, w, window_strides=(1,),
                                   padding=[(pad, pad)],
                                   dimension_numbers=('NCH', 'OIH', 'NCH'))
    return out + b[None, :, None]


def ref_forward(queries, keys, p, temperature):
    q = jnp.maximum(_conv1d_ref(queries, p['wq1'], p['bq1'], 1), 0.0)
    q = jnp.maximum(_conv1d_ref(q, p['wq2'], p['bq2'], 0), 0.0)
    q = _conv1d_ref(q, p['wq3'], p['bq3'], 0)                    # (B, A, T1)
    k = jnp.maximum(_conv1d_ref(keys, p['wk1'], p['bk1'], 1), 0.0)
    k = _conv1d_ref(k, p['wk2'], p['bk2'], 0)                    # (B, A, T2)
    dist = jnp.sum((q[:, :, :, None] - k[:, :, None, :]) ** 2, axis=1,
                   keepdims=True)                                # (B, 1, T1, T2)
    scores = -temperature * dist
    attn = jax.nn.softmax(scores, axis=3)
    return attn, scores


# ----------------------------------------------------------------------------
if __name__ == "__main__":
    B = 2
    n_mel, n_text, n_att = 16, 32, 16
    T1, T2 = 16, 8
    temperature = 0.0005

    root = jax.random.PRNGKey(0)
    k_params, k_q, k_k = jax.random.split(root, 3)
    kernel_params, torch_params = make_params(k_params, n_mel, n_text, n_att)

    queries = jax.random.normal(k_q, (B, n_mel, T1), jnp.float32)   # mel-like
    keys_in = jax.random.normal(k_k, (B, n_text, T2), jnp.float32)  # text-like

    attn, attn_logprob = alignment_encoder(queries, keys_in, kernel_params,
                                           temperature)
    jax.block_until_ready((attn, attn_logprob))

    attn_ref, logp_ref = ref_forward(queries, keys_in, torch_params, temperature)

    assert attn.shape == (B, 1, T1, T2)
    assert attn_logprob.shape == (B, 1, T1, T2)
    attn32 = attn.astype(jnp.float32)
    assert jnp.allclose(jnp.sum(attn32, axis=3), 1.0, atol=1e-2)
    assert jnp.allclose(attn32, attn_ref, atol=1e-2, rtol=1e-2)
    assert jnp.allclose(attn_logprob, logp_ref, atol=2e-3, rtol=2e-2)

    print("KERNEL_OK")
</pallas_src>

<mosaic_0001>
module attributes {stable_mosaic.version = 11 : i64} {
  func.func @alignment_kernel(%arg0: i32, %arg1: i32, %arg2: memref<1x16x128xf32, #tpu.memory_space<vmem>>, %arg3: memref<1x32x128xf32, #tpu.memory_space<vmem>>, %arg4: memref<384x128xf32, #tpu.memory_space<vmem>>, %arg5: memref<1x128xf32, #tpu.memory_space<vmem>>, %arg6: memref<128x128xf32, #tpu.memory_space<vmem>>, %arg7: memref<1x128xf32, #tpu.memory_space<vmem>>, %arg8: memref<128x128xf32, #tpu.memory_space<vmem>>, %arg9: memref<1x128xf32, #tpu.memory_space<vmem>>, %arg10: memref<64x96xf32, #tpu.memory_space<vmem>>, %arg11: memref<64x1xf32, #tpu.memory_space<vmem>>, %arg12: memref<128x64xf32, #tpu.memory_space<vmem>>, %arg13: memref<128x1xf32, #tpu.memory_space<vmem>>, %arg14: memref<1x16x128xbf16, #tpu.memory_space<vmem>>, %arg15: memref<1x16x128xf32, #tpu.memory_space<vmem>>, %arg16: memref<16x128xbf16, #tpu.memory_space<vmem>>, %arg17: memref<16x1xf32, #tpu.memory_space<vmem>>, %arg18: memref<128x128xbf16, #tpu.memory_space<vmem>>, %arg19: memref<1x128xf32, #tpu.memory_space<vmem>>) attributes {dimension_semantics = [#tpu.dimension_semantics<parallel>, #tpu.dimension_semantics<arbitrary>], iteration_bounds = array<i64: 2, 1>, scalar_prefetch = 0 : i64, scratch_operands = 4 : i64, tpu.core_type = #tpu.core_type<tc>, window_params = [{transform_indices = @transform_0, window_bounds = array<i64: 1, 16, 128>}, {transform_indices = @transform_1, window_bounds = array<i64: 1, 32, 128>}, {pipeline_mode = #tpu.pipeline_mode<synchronous>, transform_indices = @transform_2, window_bounds = array<i64: 384, 128>}, {pipeline_mode = #tpu.pipeline_mode<synchronous>, transform_indices = @transform_3, window_bounds = array<i64: 1, 128>}, {pipeline_mode = #tpu.pipeline_mode<synchronous>, transform_indices = @transform_4, window_bounds = array<i64: 128, 128>}, {pipeline_mode = #tpu.pipeline_mode<synchronous>, transform_indices = @transform_5, window_bounds = array<i64: 1, 128>}, {pipeline_mode = #tpu.pipeline_mode<synchronous>, transform_indices = @transform_6, window_bounds = array<i64: 128, 128>}, {pipeline_mode = #tpu.pipeline_mode<synchronous>, transform_indices = @transform_7, window_bounds = array<i64: 1, 128>}, {pipeline_mode = #tpu.pipeline_mode<synchronous>, transform_indices = @transform_8, window_bounds = array<i64: 64, 96>}, {pipeline_mode = #tpu.pipeline_mode<synchronous>, transform_indices = @transform_9, window_bounds = array<i64: 64, 1>}, {pipeline_mode = #tpu.pipeline_mode<synchronous>, transform_indices = @transform_10, window_bounds = array<i64: 128, 64>}, {pipeline_mode = #tpu.pipeline_mode<synchronous>, transform_indices = @transform_11, window_bounds = array<i64: 128, 1>}, {transform_indices = @transform_12, window_bounds = array<i64: 1, 16, 128>}, {transform_indices = @transform_13, window_bounds = array<i64: 1, 16, 128>}]} {
    %c0_i32 = arith.constant 0 : i32
    %0 = arith.cmpi eq, %arg1, %c0_i32 : i32
    %1 = arith.extui %0 : i1 to i32
    %c0_i32_0 = arith.constant 0 : i32
    %2 = arith.cmpi ne, %1, %c0_i32_0 : i32
    scf.if %2 {
      %c0_18 = arith.constant 0 : index
      %c0_19 = arith.constant 0 : index
      %c0_20 = arith.constant 0 : index
      %44 = vector.load %arg2[%c0_18, %c0_19, %c0_20] : memref<1x16x128xf32, #tpu.memory_space<vmem>>, vector<1x16x128xf32>
      %45 = vector.shape_cast %44 : vector<1x16x128xf32> to vector<16x128xf32>
      %46 = tpu.iota {dimensions = array<i32: 0>} : vector<16x128xi32>
      %c1_i32 = arith.constant 1 : i32
      %47 = vector.broadcast %c1_i32 : i32 to vector<16x128xi32>
      %48 = arith.cmpi sge, %46, %47 : vector<16x128xi32>
      %c1_i32_21 = arith.constant 1 : i32
      %49 = tpu.dynamic_rotate %45 by %c1_i32_21 dim 0 : vector<16x128xf32>, i32 -> vector<16x128xf32>
      %cst_22 = arith.constant 0.000000e+00 : f32
      %50 = vector.broadcast %cst_22 : f32 to vector<16x128xf32>
      %51 = arith.select %48, %49, %50 : vector<16x128xi1>, vector<16x128xf32>
      %c14_i32 = arith.constant 14 : i32
      %52 = vector.broadcast %c14_i32 : i32 to vector<16x128xi32>
      %53 = arith.cmpi sle, %46, %52 : vector<16x128xi32>
      %c15_i32 = arith.constant 15 : i32
      %54 = tpu.dynamic_rotate %45 by %c15_i32 dim 0 : vector<16x128xf32>, i32 -> vector<16x128xf32>
      %cst_23 = arith.constant 0.000000e+00 : f32
      %55 = vector.broadcast %cst_23 : f32 to vector<16x128xf32>
      %56 = arith.select %53, %54, %55 : vector<16x128xi1>, vector<16x128xf32>
      %57 = tpu.concatenate %51, %45, %56 in 1 : vector<16x128xf32>, vector<16x128xf32>, vector<16x128xf32> -> vector<16x384xf32>
      %c0_24 = arith.constant 0 : index
      %c0_25 = arith.constant 0 : index
      %58 = vector.load %arg4[%c0_24, %c0_25] : memref<384x128xf32, #tpu.memory_space<vmem>>, vector<384x128xf32>
      %cst_26 = arith.constant dense<0.000000e+00> : vector<16x128xf32>
      %59 = tpu.matmul %57, %58, %cst_26 {dimension_numbers = #tpu.dot_dimension_numbers<[1], [0], [0], [1], [0, 0, 1, 1], [], []>} : vector<16x384xf32>, vector<384x128xf32>, vector<16x128xf32> -> vector<16x128xf32>
      %c0_27 = arith.constant 0 : index
      %c0_28 = arith.constant 0 : index
      %60 = vector.load %arg5[%c0_27, %c0_28] : memref<1x128xf32, #tpu.memory_space<vmem>>, vector<1x128xf32>
      %61 = vector.broadcast %60 : vector<1x128xf32> to vector<16x128xf32>
      %62 = arith.addf %59, %61 : vector<16x128xf32>
      %cst_29 = arith.constant 0.000000e+00 : f32
      %63 = vector.broadcast %cst_29 : f32 to vector<16x128xf32>
      %64 = arith.maximumf %62, %63 : vector<16x128xf32>
      %c0_30 = arith.constant 0 : index
      %c0_31 = arith.constant 0 : index
      %65 = vector.load %arg6[%c0_30, %c0_31] : memref<128x128xf32, #tpu.memory_space<vmem>>, vector<128x128xf32>
      %cst_32 = arith.constant dense<0.000000e+00> : vector<16x128xf32>
      %66 = tpu.matmul %64, %65, %cst_32 {dimension_numbers = #tpu.dot_dimension_numbers<[1], [0], [0], [1], [0, 0, 1, 1], [], []>} : vector<16x128xf32>, vector<128x128xf32>, vector<16x128xf32> -> vector<16x128xf32>
      %c0_33 = arith.constant 0 : index
      %c0_34 = arith.constant 0 : index
      %67 = vector.load %arg7[%c0_33, %c0_34] : memref<1x128xf32, #tpu.memory_space<vmem>>, vector<1x128xf32>
      %68 = vector.broadcast %67 : vector<1x128xf32> to vector<16x128xf32>
      %69 = arith.addf %66, %68 : vector<16x128xf32>
      %cst_35 = arith.constant 0.000000e+00 : f32
      %70 = vector.broadcast %cst_35 : f32 to vector<16x128xf32>
      %71 = arith.maximumf %69, %70 : vector<16x128xf32>
      %c0_36 = arith.constant 0 : index
      %c0_37 = arith.constant 0 : index
      %72 = vector.load %arg8[%c0_36, %c0_37] : memref<128x128xf32, #tpu.memory_space<vmem>>, vector<128x128xf32>
      %cst_38 = arith.constant dense<0.000000e+00> : vector<16x128xf32>
      %73 = tpu.matmul %71, %72, %cst_38 {dimension_numbers = #tpu.dot_dimension_numbers<[1], [0], [0], [1], [0, 0, 1, 1], [], []>} : vector<16x128xf32>, vector<128x128xf32>, vector<16x128xf32> -> vector<16x128xf32>
      %c0_39 = arith.constant 0 : index
      %c0_40 = arith.constant 0 : index
      %74 = vector.load %arg9[%c0_39, %c0_40] : memref<1x128xf32, #tpu.memory_space<vmem>>, vector<1x128xf32>
      %75 = vector.broadcast %74 : vector<1x128xf32> to vector<16x128xf32>
      %76 = arith.addf %73, %75 : vector<16x128xf32>
      %77 = arith.mulf %76, %76 : vector<16x128xf32>
      %cst_41 = arith.constant dense<0.000000e+00> : vector<16xf32>
      %78 = vector.multi_reduction <add>, %77, %cst_41 [1] : vector<16x128xf32> to vector<16xf32>
      %79 = vector.shape_cast %78 : vector<16xf32> to vector<16x1xf32>
      %c0_42 = arith.constant 0 : index
      %c0_43 = arith.constant 0 : index
      %80 = vector.load %arg17[%c0_42, %c0_43] : memref<16x1xf32, #tpu.memory_space<vmem>>, vector<16x1xf32>
      tpu.vector_store %arg17[%c0_42, %c0_43], %79 {strides = array<i32>} : memref<16x1xf32, #tpu.memory_space<vmem>>, vector<16x1xf32>,
      %81 = arith.truncf %76 : vector<16x128xf32> to vector<16x128xbf16>
      %c0_44 = arith.constant 0 : index
      %c0_45 = arith.constant 0 : index
      %82 = vector.load %arg16[%c0_44, %c0_45] : memref<16x128xbf16, #tpu.memory_space<vmem>>, vector<16x128xbf16>
      tpu.vector_store %arg16[%c0_44, %c0_45], %81 {strides = array<i32>} : memref<16x128xbf16, #tpu.memory_space<vmem>>, vector<16x128xbf16>,
      %c0_46 = arith.constant 0 : index
      %c0_47 = arith.constant 0 : index
      %c0_48 = arith.constant 0 : index
      %83 = vector.load %arg3[%c0_46, %c0_47, %c0_48] : memref<1x32x128xf32, #tpu.memory_space<vmem>>, vector<1x32x128xf32>
      %84 = vector.shape_cast %83 : vector<1x32x128xf32> to vector<32x128xf32>
      %85 = tpu.iota {dimensions = array<i32: 1>} : vector<32x128xi32>
      %c1_i32_49 = arith.constant 1 : i32
      %86 = vector.broadcast %c1_i32_49 : i32 to vector<32x128xi32>
      %87 = arith.cmpi sge, %85, %86 : vector<32x128xi32>
      %c1_i32_50 = arith.constant 1 : i32
      %88 = tpu.dynamic_rotate %84 by %c1_i32_50 dim 1 : vector<32x128xf32>, i32 -> vector<32x128xf32>
      %cst_51 = arith.constant 0.000000e+00 : f32
      %89 = vector.broadcast %cst_51 : f32 to vector<32x128xf32>
      %90 = arith.select %87, %88, %89 : vector<32x128xi1>, vector<32x128xf32>
      %c126_i32 = arith.constant 126 : i32
      %91 = vector.broadcast %c126_i32 : i32 to vector<32x128xi32>
      %92 = arith.cmpi sle, %85, %91 : vector<32x128xi32>
      %c127_i32 = arith.constant 127 : i32
      %93 = tpu.dynamic_rotate %84 by %c127_i32 dim 1 : vector<32x128xf32>, i32 -> vector<32x128xf32>
      %cst_52 = arith.constant 0.000000e+00 : f32
      %94 = vector.broadcast %cst_52 : f32 to vector<32x128xf32>
      %95 = arith.select %92, %93, %94 : vector<32x128xi1>, vector<32x128xf32>
      %96 = tpu.concatenate %90, %84, %95 in 0 : vector<32x128xf32>, vector<32x128xf32>, vector<32x128xf32> -> vector<96x128xf32>
      %c0_53 = arith.constant 0 : index
      %c0_54 = arith.constant 0 : index
      %97 = vector.load %arg10[%c0_53, %c0_54] : memref<64x96xf32, #tpu.memory_space<vmem>>, vector<64x96xf32>
      %cst_55 = arith.constant dense<0.000000e+00> : vector<64x128xf32>
      %98 = tpu.matmul %97, %96, %cst_55 {dimension_numbers = #tpu.dot_dimension_numbers<[1], [0], [0], [1], [0, 0, 1, 1], [], []>} : vector<64x96xf32>, vector<96x128xf32>, vector<64x128xf32> -> vector<64x128xf32>
      %c0_56 = arith.constant 0 : index
      %c0_57 = arith.constant 0 : index
      %99 = vector.load %arg11[%c0_56, %c0_57] : memref<64x1xf32, #tpu.memory_space<vmem>>, vector<64x1xf32>
      %100 = vector.broadcast %99 : vector<64x1xf32> to vector<64x128xf32>
      %101 = arith.addf %98, %100 : vector<64x128xf32>
      %cst_58 = arith.constant 0.000000e+00 : f32
      %102 = vector.broadcast %cst_58 : f32 to vector<64x128xf32>
      %103 = arith.maximumf %101, %102 : vector<64x128xf32>
      %c0_59 = arith.constant 0 : index
      %c0_60 = arith.constant 0 : index
      %104 = vector.load %arg12[%c0_59, %c0_60] : memref<128x64xf32, #tpu.memory_space<vmem>>, vector<128x64xf32>
      %cst_61 = arith.constant dense<0.000000e+00> : vector<128x128xf32>
      %105 = tpu.matmul %104, %103, %cst_61 {dimension_numbers = #tpu.dot_dimension_numbers<[1], [0], [0], [1], [0, 0, 1, 1], [], []>} : vector<128x64xf32>, vector<64x128xf32>, vector<128x128xf32> -> vector<128x128xf32>
      %c0_62 = arith.constant 0 : index
      %c0_63 = arith.constant 0 : index
      %106 = vector.load %arg13[%c0_62, %c0_63] : memref<128x1xf32, #tpu.memory_space<vmem>>, vector<128x1xf32>
      %107 = vector.broadcast %106 : vector<128x1xf32> to vector<128x128xf32>
      %108 = arith.addf %105, %107 : vector<128x128xf32>
      %109 = arith.mulf %108, %108 : vector<128x128xf32>
      %cst_64 = arith.constant dense<0.000000e+00> : vector<128xf32>
      %110 = vector.multi_reduction <add>, %109, %cst_64 [0] : vector<128x128xf32> to vector<128xf32>
      %111 = vector.shape_cast %110 : vector<128xf32> to vector<1x128xf32>
      %c0_65 = arith.constant 0 : index
      %c0_66 = arith.constant 0 : index
      %112 = vector.load %arg19[%c0_65, %c0_66] : memref<1x128xf32, #tpu.memory_space<vmem>>, vector<1x128xf32>
      tpu.vector_store %arg19[%c0_65, %c0_66], %111 {strides = array<i32>} : memref<1x128xf32, #tpu.memory_space<vmem>>, vector<1x128xf32>,
      %113 = arith.truncf %108 : vector<128x128xf32> to vector<128x128xbf16>
      %c0_67 = arith.constant 0 : index
      %c0_68 = arith.constant 0 : index
      %114 = vector.load %arg18[%c0_67, %c0_68] : memref<128x128xbf16, #tpu.memory_space<vmem>>, vector<128x128xbf16>
      tpu.vector_store %arg18[%c0_67, %c0_68], %113 {strides = array<i32>} : memref<128x128xbf16, #tpu.memory_space<vmem>>, vector<128x128xbf16>,
    } else {
    }
    %c16_i32 = arith.constant 16 : i32
    %3 = arith.muli %arg1, %c16_i32 : i32
    %4 = tpu.assume_multiple %3, 16 : i32
    %5 = arith.index_cast %4 : i32 to index
    %c0 = arith.constant 0 : index
    %6 = vector.load %arg16[%5, %c0] : memref<16x128xbf16, #tpu.memory_space<vmem>>, vector<16x128xbf16>
    %c0_1 = arith.constant 0 : index
    %c0_2 = arith.constant 0 : index
    %7 = vector.load %arg18[%c0_1, %c0_2] : memref<128x128xbf16, #tpu.memory_space<vmem>>, vector<128x128xbf16>
    %cst = arith.constant dense<0.000000e+00> : vector<16x128xf32>
    %8 = tpu.matmul %6, %7, %cst {dimension_numbers = #tpu.dot_dimension_numbers<[1], [0], [0], [1], [0, 0, 1, 1], [], []>} : vector<16x128xbf16>, vector<128x128xbf16>, vector<16x128xf32> -> vector<16x128xf32>
    %9 = arith.index_cast %4 : i32 to index
    %c0_3 = arith.constant 0 : index
    %10 = vector.load %arg17[%9, %c0_3] : memref<16x1xf32, #tpu.memory_space<vmem>>, vector<16x1xf32>
    %c0_4 = arith.constant 0 : index
    %c0_5 = arith.constant 0 : index
    %11 = vector.load %arg19[%c0_4, %c0_5] : memref<1x128xf32, #tpu.memory_space<vmem>>, vector<1x128xf32>
    %12 = vector.broadcast %10 : vector<16x1xf32> to vector<16x128xf32>
    %13 = vector.broadcast %11 : vector<1x128xf32> to vector<16x128xf32>
    %14 = arith.addf %12, %13 : vector<16x128xf32>
    %cst_6 = arith.constant 2.000000e+00 : f32
    %15 = vector.broadcast %cst_6 : f32 to vector<16x128xf32>
    %16 = arith.mulf %15, %8 : vector<16x128xf32>
    %17 = arith.subf %14, %16 : vector<16x128xf32>
    %cst_7 = arith.constant 0.000000e+00 : f32
    %18 = vector.broadcast %cst_7 : f32 to vector<16x128xf32>
    %19 = arith.maximumf %17, %18 : vector<16x128xf32>
    %cst_8 = arith.constant -5.000000e-04 : f32
    %20 = vector.broadcast %cst_8 : f32 to vector<16x128xf32>
    %21 = arith.mulf %20, %19 : vector<16x128xf32>
    %c0_9 = arith.constant 0 : index
    %c0_10 = arith.constant 0 : index
    %c0_11 = arith.constant 0 : index
    %22 = vector.load %arg15[%c0_9, %c0_10, %c0_11] : memref<1x16x128xf32, #tpu.memory_space<vmem>>, vector<1x16x128xf32>
    %23 = vector.shape_cast %22 : vector<1x16x128xf32> to vector<16x128xf32>
    %24 = vector.shape_cast %21 : vector<16x128xf32> to vector<1x16x128xf32>
    tpu.vector_store %arg15[%c0_9, %c0_10, %c0_11], %24 {strides = array<i32>} : memref<1x16x128xf32, #tpu.memory_space<vmem>>, vector<1x16x128xf32>,
    %25 = tpu.iota {dimensions = array<i32: 1>} : vector<16x128xi32>
    %c8_i32 = arith.constant 8 : i32
    %26 = vector.broadcast %c8_i32 : i32 to vector<16x128xi32>
    %27 = arith.cmpi slt, %25, %26 : vector<16x128xi32>
    %cst_12 = arith.constant -1.000000e+30 : f32
    %28 = vector.broadcast %cst_12 : f32 to vector<16x128xf32>
    %29 = arith.select %27, %21, %28 : vector<16x128xi1>, vector<16x128xf32>
    %cst_13 = arith.constant dense<0xFF800000> : vector<16xf32>
    %30 = vector.multi_reduction <maximumf>, %29, %cst_13 [1] : vector<16x128xf32> to vector<16xf32>
    %31 = vector.shape_cast %30 : vector<16xf32> to vector<16x1xf32>
    %32 = vector.broadcast %31 : vector<16x1xf32> to vector<16x128xf32>
    %33 = arith.subf %29, %32 : vector<16x128xf32>
    %34 = math.exp %33 : vector<16x128xf32>
    %cst_14 = arith.constant dense<0.000000e+00> : vector<16xf32>
    %35 = vector.multi_reduction <add>, %34, %cst_14 [1] : vector<16x128xf32> to vector<16xf32>
    %36 = vector.shape_cast %35 : vector<16xf32> to vector<16x1xf32>
    %37 = tpu.reciprocal %36 {approx = true} : vector<16x1xf32> -> vector<16x1xf32>
    %38 = vector.broadcast %37 : vector<16x1xf32> to vector<16x128xf32>
    %39 = arith.mulf %34, %38 : vector<16x128xf32>
    %40 = arith.truncf %39 : vector<16x128xf32> to vector<16x128xbf16>
    %c0_15 = arith.constant 0 : index
    %c0_16 = arith.constant 0 : index
    %c0_17 = arith.constant 0 : index
    %41 = vector.load %arg14[%c0_15, %c0_16, %c0_17] : memref<1x16x128xbf16, #tpu.memory_space<vmem>>, vector<1x16x128xbf16>
    %42 = vector.shape_cast %41 : vector<1x16x128xbf16> to vector<16x128xbf16>
    %43 = vector.shape_cast %40 : vector<16x128xbf16> to vector<1x16x128xbf16>
    tpu.vector_store %arg14[%c0_15, %c0_16, %c0_17], %43 {strides = array<i32>} : memref<1x16x128xbf16, #tpu.memory_space<vmem>>, vector<1x16x128xbf16>,
    return
  }
  func.func @transform_0(%arg0: i32, %arg1: i32) -> (i32, i32, i32) {
    %c0_i32 = arith.constant 0 : i32
    %c0_i32_0 = arith.constant 0 : i32
    %c0_i32_1 = arith.constant 0 : i32
    return %arg0, %c0_i32, %c0_i32_0 : i32, i32, i32
  }
  func.func @transform_1(%arg0: i32, %arg1: i32) -> (i32, i32, i32) {
    %c0_i32 = arith.constant 0 : i32
    %c0_i32_0 = arith.constant 0 : i32
    %c0_i32_1 = arith.constant 0 : i32
    return %arg0, %c0_i32, %c0_i32_0 : i32, i32, i32
  }
  func.func @transform_2(%arg0: i32, %arg1: i32) -> (i32, i32) {
    %c0_i32 = arith.constant 0 : i32
    %c0_i32_0 = arith.constant 0 : i32
    %c0_i32_1 = arith.constant 0 : i32
    return %c0_i32, %c0_i32_0 : i32, i32
  }
  func.func @transform_3(%arg0: i32, %arg1: i32) -> (i32, i32) {
    %c0_i32 = arith.constant 0 : i32
    %c0_i32_0 = arith.constant 0 : i32
    %c0_i32_1 = arith.constant 0 : i32
    return %c0_i32, %c0_i32_0 : i32, i32
  }
  func.func @transform_4(%arg0: i32, %arg1: i32) -> (i32, i32) {
    %c0_i32 = arith.constant 0 : i32
    %c0_i32_0 = arith.constant 0 : i32
    %c0_i32_1 = arith.constant 0 : i32
    return %c0_i32, %c0_i32_0 : i32, i32
  }
  func.func @transform_5(%arg0: i32, %arg1: i32) -> (i32, i32) {
    %c0_i32 = arith.constant 0 : i32
    %c0_i32_0 = arith.constant 0 : i32
    %c0_i32_1 = arith.constant 0 : i32
    return %c0_i32, %c0_i32_0 : i32, i32
  }
  func.func @transform_6(%arg0: i32, %arg1: i32) -> (i32, i32) {
    %c0_i32 = arith.constant 0 : i32
    %c0_i32_0 = arith.constant 0 : i32
    %c0_i32_1 = arith.constant 0 : i32
    return %c0_i32, %c0_i32_0 : i32, i32
  }
  func.func @transform_7(%arg0: i32, %arg1: i32) -> (i32, i32) {
    %c0_i32 = arith.constant 0 : i32
    %c0_i32_0 = arith.constant 0 : i32
    %c0_i32_1 = arith.constant 0 : i32
    return %c0_i32, %c0_i32_0 : i32, i32
  }
  func.func @transform_8(%arg0: i32, %arg1: i32) -> (i32, i32) {
    %c0_i32 = arith.constant 0 : i32
    %c0_i32_0 = arith.constant 0 : i32
    %c0_i32_1 = arith.constant 0 : i32
    return %c0_i32, %c0_i32_0 : i32, i32
  }
  func.func @transform_9(%arg0: i32, %arg1: i32) -> (i32, i32) {
    %c0_i32 = arith.constant 0 : i32
    %c0_i32_0 = arith.constant 0 : i32
    %c0_i32_1 = arith.constant 0 : i32
    return %c0_i32, %c0_i32_0 : i32, i32
  }
  func.func @transform_10(%arg0: i32, %arg1: i32) -> (i32, i32) {
    %c0_i32 = arith.constant 0 : i32
    %c0_i32_0 = arith.constant 0 : i32
    %c0_i32_1 = arith.constant 0 : i32
    return %c0_i32, %c0_i32_0 : i32, i32
  }
  func.func @transform_11(%arg0: i32, %arg1: i32) -> (i32, i32) {
    %c0_i32 = arith.constant 0 : i32
    %c0_i32_0 = arith.constant 0 : i32
    %c0_i32_1 = arith.constant 0 : i32
    return %c0_i32, %c0_i32_0 : i32, i32
  }
  func.func @transform_12(%arg0: i32, %arg1: i32) -> (i32, i32, i32) {
    %c0_i32 = arith.constant 0 : i32
    %c0_i32_0 = arith.constant 0 : i32
    return %arg0, %arg1, %c0_i32 : i32, i32, i32
  }
  func.func @transform_13(%arg0: i32, %arg1: i32) -> (i32, i32, i32) {
    %c0_i32 = arith.constant 0 : i32
    %c0_i32_0 = arith.constant 0 : i32
    return %arg0, %arg1, %c0_i32 : i32, i32, i32
  }
}

</mosaic_0001>

<bundles_post_ra>
// kernel: tpu_custom_call.1
= control target key start
LH: loop header
LB: loop body
LE: loop exit
PB: predicated region body
PF: predicated region fallthrough
CT: control target
= control target key end

     0   :  { %s3725_s0 = inlined_call_operand.hbm [shape: f32[2,16,128], index: 0, kind: input, shape index: {}]   ;;  %s3726_s1 = inlined_call_operand.hbm [shape: f32[2,32,128], index: 1, kind: input, shape index: {}]   ;;  %s3727_s2 = inlined_call_operand.vmem [shape: f32[384,128], index: 2, kind: input, shape index: {}]   ;;  %s3728_s3 = inlined_call_operand.vmem [shape: f32[1,128], index: 3, kind: input, shape index: {}]   ;;  %s3729_s4 = inlined_call_operand.hbm [shape: f32[128,128], index: 4, kind: input, shape index: {}]   ;;  %s3730_s5 = inlined_call_operand.vmem [shape: f32[1,128], index: 5, kind: input, shape index: {}]   ;;  %s3731_s6 = inlined_call_operand.hbm [shape: f32[128,128], index: 6, kind: input, shape index: {}]   ;;  %s3732_s7 = inlined_call_operand.vmem [shape: f32[1,128], index: 7, kind: input, shape index: {}]   ;;  %s3733_s8 = inlined_call_operand.hbm [shape: f32[64,96], index: 8, kind: input, shape index: {}]   ;;  %s3734_s9 = inlined_call_operand.vmem [shape: f32[64,1], index: 9, kind: input, shape index: {}]   ;;  %s3735_s10 = inlined_call_operand.vmem [shape: f32[128,64], index: 10, kind: input, shape index: {}]   ;;  %s3736_s11 = inlined_call_operand.vmem [shape: f32[128,1], index: 11, kind: input, shape index: {}]   ;;  %s3737_s12 = inlined_call_operand.hbm [shape: bf16[2,16,128], index: 12, kind: output, shape index: {0}]   ;;  %s3738_s13 = inlined_call_operand.hbm [shape: f32[2,16,128], index: 13, kind: output, shape index: {1}]  }
   0x1   :  { %3755 = sst [smem:[#allocation32_spill]] %s3725_s0 }
   0x2   :  { %3756 = sst [smem:[#allocation33_spill]] %s3729_s4 }
   0x3   :  { %3757 = sst [smem:[#allocation34_spill]] %s3731_s6 }
   0x4   :  { %3758 = sst [smem:[#allocation35_spill]] %s3732_s7 }
   0x5   :  { %3759 = sst [smem:[#allocation36_spill]] %s3733_s8 }
   0x6   :  { %3760 = sst [smem:[#allocation37_spill]] %s3737_s12 }
   0x7   :  { %3761 = sst [smem:[#allocation38_spill]] %s3738_s13 }
   0x8   :  { %19 = vsyncpa [#allocation7], 0 }
   0x9   :  { %21 = vsyncpa [#allocation7 + $0x1], 0 }
   0xa   :  { %22 = vsyncpa [#allocation10], 0 }
   0xb   :  { %24 = vsyncpa [#allocation10 + $0x1], 0 }
   0xc   :  { %25 = vsyncpa [#allocation13], 0 }
   0xd   :  { %26 = vsyncpa [#allocation8], 0 }
   0xe   :  { %28 = vsyncpa [#allocation8 + $0x1], 0 }
   0xf   :  { %29 = vsyncpa [#allocation17], 0 }
  0x10   :  { %31 = vsyncpa [#allocation17 + $0x1], 0  ;;  %s3071_s25 = smov 0   ;;  %s3073_s26 = smov 0  }
  0x11   :  { %s3075_s27 = smov 0   ;;  %s3077_s28 = smov 0  }
  0x12   :  { %s3079_s29 = smov 0   ;;  %s3081_s30 = smov 0  }
  0x13 LB: > { %3762 = sst [smem:[#allocation24_spill]] %s2961_s25  ;;  %s3102_s14 = sadd.s32 4294967295, %s2981_s30   ;;  %s2981_s30 = sphi %s3081_s30, %s37_s30   ;;  %s2977_s29 = sphi %s3079_s29, %s3801_s29   ;;  %s2973_s28 = sphi %s3077_s28, %s3800_s28   ;;  %s2969_s27 = sphi %s3075_s27, %s3796_s27   ;;  %s2965_s26 = sphi %s3073_s26, %s3799_s26   ;;  %s2961_s25 = sphi %s3071_s25, %s3798_s25  }
  0x14   : > { %3763 = sst [smem:[#allocation25_spill]] %s2969_s27  ;;  %s2070_s15 = sadd.s32 4294967294, %s2981_s30  }
  0x15   : > { %3764 = sst [smem:[#allocation26_spill]] %s2973_s28  ;;  %p69_p0 = scmp.ne.s32.totalorder %s2965_s26, %s2961_s25 }
  0x16   : > { %3765 = sst [smem:[#allocation27_spill]] %s2981_s30  ;;  %p3743_p1 = scmp.eq.s32.totalorder %s3102_s14, 0 }
  0x17   : > { %p331_p2 = scmp.eq.s32.totalorder %s3102_s14, 1  ;;  %p337_p3 = scmp.eq.s32.totalorder %s2070_s15, 1 }
  0x18   : > { %p3111_p4 = por %p3743_p1, %p69_p0  ;;  %p2071_p5 = scmp.ge.s32.totalorder %s2981_s30, 1 }
  0x19   : > { %p3116_p6 = por %p337_p3, %p69_p0  ;;  %p372_p7 = scmp.lt.s32.totalorder %s2981_s30, 3 }
  0x1a   : > { %s2983_s19 = smov [#allocation11]   ;;  %s2984_s22 = smov [#allocation12]  }
  0x1b   : > { %s3767_s17 = scalar_select %p3116_p6, 1, 0 }
  0x1c   : > { %p3121_p8 = pnand %p2071_p5, %p372_p7  ;;  %s390_s20 = sshll.u32 %s2983_s19, 4  ;;  %s391_s20 = int_to_ptr.vmem [resolvable:$true] %s390_s20 }
  0x1d   : > { %3768 = sst [smem:[#allocation28_spill]] %s3767_s17  ;;  %s406_s23 = sshll.u32 %s2984_s22, 4  ;;  %s407_s23 = int_to_ptr.vmem [resolvable:$true] %s406_s23 }
  0x1e   : > { %p2612_p9 = pneg %p3121_p8  ;;  %s2985_s24 = smov [#allocation14]  }
  0x1f   : > { %s422_s15 = sshll.u32 %s2985_s24, 4  ;;  %s2736_s17 = scalar_lea.vmem %s391_s20, 2048  ;;  %s423_s15 = int_to_ptr.vmem [resolvable:$true] %s422_s15 }
  0x20   : > { %p3130_p11 = pnand %p2612_p9, %p3743_p1  ;;  %p2737_p13 = scmp.ne.s32.totalorder %s391_s20, %s2736_s17 }
  0x21   : > { %p2744_p5 = scmp.lt.s32.totalorder %s391_s20, %s391_s20  ;;  %p2745_p7 = scmp.lt.s32.totalorder %s2736_s17, %s2736_s17 }
  0x22   : > { %p2727_p12 = pneg %p3130_p11 }
  0x23   : > { %p2746_p9 = por %p2745_p7, %p2744_p5 }
  0x24   : > { %p2739_p0 = pnand %p2737_p13, %p2727_p12 }
  0x26   : > { %p2740_p3 = pneg %p2739_p0 }
  0x28   : > { %p2747_p10 = pnand %p2746_p9, %p2740_p3 }
  0x2a   : > { %2750 = shalt.err (!%p2747_p10)
}
  0x2b   : > { %s3744_s19 = smov 128   ;;  %s3746_s22 = smov 8  }
  0x2c   : > { %s3771_s4 = sld [smem:[#allocation33_spill]]  ;;  %s2762_s12 = scalar_lea.vmem %s407_s23, 2048 }
  0x2d   : > { %p2763_p13 = scmp.ne.s32.totalorder %s407_s23, %s2762_s12  ;;  %p2770_p3 = scmp.lt.s32.totalorder %s407_s23, %s407_s23 }
  0x2e   : > { %p2771_p10 = scmp.lt.s32.totalorder %s2762_s12, %s2762_s12 }
  0x2f   : > { %p2765_p0 = pnand %p2763_p13, %p2727_p12 }
  0x30   : > { %p2772_p7 = por %p2771_p10, %p2770_p3 }
  0x31   : > { %p2766_p5 = pneg %p2765_p0 }
  0x32   : > { %2615 = dma.hbm_to_vmem [thread:$0]  (!%p3130_p11), %s3771_s4, 2048, %s391_s20, [#allocation10], %s3744_s19, %s3744_s19, %s3746_s22  }
  0x33   : > { %p2773_p9 = pnand %p2772_p7, %p2766_p5 }
  0x35   : > { %2776 = shalt.err (!%p2773_p9)
}
  0x36   : > { %s3772_s6 = sld [smem:[#allocation34_spill]]  ;;  %s2788_s25 = scalar_lea.vmem %s423_s15, 1024 }
  0x37   : > { %p2789_p1 = scmp.ne.s32.totalorder %s423_s15, %s2788_s25  ;;  %p2796_p3 = scmp.lt.s32.totalorder %s423_s15, %s423_s15 }
  0x38   : > { %p2797_p5 = scmp.lt.s32.totalorder %s2788_s25, %s2788_s25 }
  0x39   : > { %p2791_p13 = pnand %p2789_p1, %p2727_p12 }
  0x3a   : > { %p2798_p10 = por %p2797_p5, %p2796_p3 }
  0x3b   : > { %p2792_p0 = pneg %p2791_p13 }
  0x3c   : > { %2618 = dma.hbm_to_vmem [thread:$0]  (!%p3130_p11), %s3772_s6, 2048, %s407_s23, [#allocation13], %s3744_s19, %s3744_s19, %s3746_s22  }
  0x3d   : > { %p2799_p7 = pnand %p2798_p10, %p2792_p0 }
  0x3f   : > { %2802 = shalt.err (!%p2799_p7)
}
  0x40   : > { %s3773_s8 = sld [smem:[#allocation36_spill]]  ;;  %s56_s20 = sadd.s32 1, %s2969_s27 }
  0x41   : > { %s49_s21 = sadd.s32 1, %s2977_s29  ;;  %p63_p1 = scmp.ne.s32.totalorder %s2969_s27, %s2965_s26 }
  0x42   : > { %p51_p12 = scmp.ge.s32.totalorder %s49_s21, 2  ;;  %p64_p9 = scmp.eq.s32.totalorder %s2981_s30, 0 }
  0x43   : > { %p3176_p13 = por %p331_p2, %p63_p1  ;;  %p2639_p0 = scmp.lt.s32.totalorder %s2981_s30, 2 }
  0x44   : > { %s3803_s21 = smov (%p51_p12, %s49_s21), 0  ;;  %p65_p3 = por %p64_p9, %p63_p1 }
  0x45   : > { %s3774_s23 = scalar_select %p3176_p13, 1, 0 }
  0x46   : > { %2621 = dma.hbm_to_vmem [thread:$0]  (!%p3130_p11), %s3773_s8, 1024, %s423_s15, [#allocation13], %s3744_s19, %s3744_s19, %s3746_s22  }
  0x47   : > { %3775 = sst [smem:[#allocation29_spill]] %s3774_s23  ;;  %s3184_s24 = sand.u32 1, %s2969_s27  }
  0x48   : > { %3776 = sst [smem:[#allocation30_spill]] %s3803_s21  ;;  %s53_s15 = ssub.s32 %s2977_s29, %s3803_s21 }
  0x49   : > { %p54_p11 = scmp.eq.s32.totalorder %s53_s15, 0  ;;  %s2076_s17 = sshll.u32 %s3184_s24, 4 }
  0x4a   : > { %s2165_s25 = sshll.u32 %s2977_s29, 8  ;;  %s3778_s0 = sld [smem:[#allocation32_spill]] }
  0x4b   : > { %s3191_s12 = scalar_select %p54_p11, %s2969_s27, %s56_s20  }
  0x4c   : > { %s449_s4 = scalar_lea.vmem [#allocation6], %s2076_s17  ;;  %p3198_p2 = pnand %p2639_p0, %p65_p3 }
  0x4d   : > { %3777 = sst [smem:[#allocation31_spill]] %s3191_s12  ;;  %s456_s6 = sshll.u32 %s449_s4, 4  ;;  %s457_s6 = int_to_ptr.vmem [resolvable:$true] %s456_s6 }
  0x4e   : > { %s466_s21 = sand.u32 1, %s2981_s30   ;;  %s2079_s15 = sshll.u32 %s3184_s24, 5 }
  0x4f   : > { %s446_s23 = scalar_lea.sflag [#allocation7], %s3184_s24  ;;  %p2805_p5 = pneg %p3198_p2 }
  0x50   : > { %s455_s22 = scalar_lea.hbm %s3778_s0, %s2165_s25  ;;  %s2816_s20 = scalar_lea.vmem %s457_s6, 256 }
  0x51   : > { %p2817_p10 = scmp.ne.s32.totalorder %s457_s6, %s2816_s20  ;;  %s2988_s4 = smov [#allocation6]  }
  0x52   : > { %s2821_s19 = sshll.u32 %s2988_s4, 4  ;;  %s2822_s19 = int_to_ptr.vmem [resolvable:$false] %s2821_s19 }
  0x53   : > { %p2819_p7 = pnand %p2817_p10, %p2805_p5  ;;  %s2823_s17 = scalar_lea.vmem %s2822_s19, 512 }
  0x54   : > { %p2824_p12 = scmp.lt.s32.totalorder %s457_s6, %s2822_s19  ;;  %p2825_p9 = scmp.lt.s32.totalorder %s2823_s17, %s2816_s20 }
  0x55   : > { %p2820_p1 = pneg %p2819_p7 }
  0x56   : > { %p2826_p0 = por %p2825_p9, %p2824_p12 }
  0x58   : > { %p2827_p3 = pnand %p2826_p0, %p2820_p1 }
  0x5a   : > { %2830 = shalt.err (!%p2827_p3)
}
  0x5b   : > { %s3780_s24 = smov 8   ;;  %s3781_s25 = smov 128  }
  0x5c   : > { %2625 = dma.hbm_to_vmem [thread:$0]  (!%p3198_p2), %s455_s22, 256, %s457_s6, %s446_s23, %s3781_s25, %s3781_s25, %s3780_s24  }
  0x5d   : > { %s2166_s13 = sshll.u32 %s2977_s29, 9  ;;  %s470_s27 = scalar_lea.vmem [#allocation9], %s2079_s15 }
  0x5e   : > { %s476_s4 = scalar_lea.hbm %s3726_s1, %s2166_s13  ;;  %s477_s30 = sshll.u32 %s470_s27, 4  ;;  %s478_s30 = int_to_ptr.vmem [resolvable:$true] %s477_s30 }
  0x5f   : > { %s467_s20 = scalar_lea.sflag [#allocation10], %s466_s21  ;;  %s2844_s19 = scalar_lea.vmem %s478_s30, 512 }
  0x60   : > { %p2845_p11 = scmp.ne.s32.totalorder %s478_s30, %s2844_s19  ;;  %s2989_s17 = smov [#allocation9]  }
  0x61   : > { %s2849_s28 = sshll.u32 %s2989_s17, 4  ;;  %s2850_s28 = int_to_ptr.vmem [resolvable:$false] %s2849_s28 }
  0x62   : > { %p2847_p10 = pnand %p2845_p11, %p2805_p5  ;;  %s2851_s7 = scalar_lea.vmem %s2850_s28, 1024 }
  0x63   : > { %p2852_p1 = scmp.lt.s32.totalorder %s478_s30, %s2850_s28  ;;  %p2853_p12 = scmp.lt.s32.totalorder %s2851_s7, %s2844_s19 }
  0x64   : > { %p2848_p7 = pneg %p2847_p10 }
  0x65   : > { %p2854_p9 = por %p2853_p12, %p2852_p1 }
  0x67   : > { %p2855_p0 = pnand %p2854_p9, %p2848_p7 }
  0x69   : > { %2858 = shalt.err (!%p2855_p0)
}
  0x6a   : > { %2628 = dma.hbm_to_vmem [thread:$0]  (!%p3198_p2), %s476_s4, 512, %s478_s30, %s467_s20, %s3781_s25, %s3781_s25, %s3780_s24  }
  0x6b   : > { %489 = sbr.rel (%p3121_p8) target bundleno = 1410 (0x582), region = 68  ;;  %s3230_s0 = sand.u32 (!%p3121_p8), 1, %s2965_s26  }
  0x6c   : > { %s2083_s6 = sshll.u32 (!%p3121_p8), %s3230_s0, 4  ;;  %s492_s7 = scalar_lea.sflag (!%p3121_p8), [#allocation7], %s3230_s0 }
  0x6d   : > { %s3236_s27 = scalar_lea.vmem (!%p3121_p8), [#allocation6], %s2083_s6 }
  0x70   : > { %2936 = dma.done.wait (%p3111_p4), %s492_s7, 256  }
  0x71   : > { %2938 = vsyncadd (%p3111_p4), %s492_s7, 4294967040  ;;  %s500_s8 = sand.u32 1, %s3102_s14   ;;  %s2084_s28 = sshll.u32 %s3230_s0, 5 }
  0x72   : > { %s501_s30 = scalar_lea.sflag [#allocation10], %s500_s8  ;;  %s3244_s18 = scalar_lea.vmem [#allocation9], %s2084_s28 }
  0x73   : > { %2940 = dma.done.wait (%p3111_p4), %s501_s30, 512  }
  0x74   : > { %2942 = vsyncadd (%p3111_p4), %s501_s30, 4294966784  ;;  %p3782_p8 = scmp.eq.s32.totalorder %s3102_s14, 0 }
  0x76   : > { %2944 = dma.done.wait (%p3782_p8), [#allocation10], 2048   ;;  %p3783_p2 = pmov %p3782_p8 }
  0x78   : > { %2946 = vsyncadd (%p3783_p2), [#allocation10], 4294965248  ;;  %p3784_p5 = pmov %p3783_p2 }
  0x79   : > { %p3785_p3 = pmov %p3783_p2 }
  0x7a   : > { %2948 = dma.done.wait (%p3784_p5), [#allocation13], 3072  }
  0x7b   : > { %2950 = vsyncadd (%p3785_p3), [#allocation13], 4294964224  ;;  %v630_v0 = vld [vmem:[%s3727_s2 + $0xf8] sm:$0xff]  ;;  %v629_v2 = vld [vmem:[%s3727_s2 + $0xf0] sm:$0xff]  ;;  %v578_v33 = vlaneseq  ;;  %s2990_s15 = smov 127   ;;  %s2991_s24 = smov 1  }
  0x7c   : > { %v614_v1 = vld [vmem:[%s3727_s2 + $0x78] sm:$0xff]  ;;  %2246 = vmatprep.subr.mxu0 %v630_v0  ;;  %v613_v3 = vld [vmem:[%s3727_s2 + $0x70] sm:$0xff]  ;;  %v628_v5 = vld [vmem:[%s3727_s2 + $0xe8] sm:$0xff]  ;;  %vm1111_vm5 = vcmask 785408   ;;  %vm1361_vm7 = vcmask 523264   ;;  %vm2994_vm8 = vmmov 0  }
  0x7d   : > { %v646_v4 = vld [vmem:[%s3727_s2 + $0x178] sm:$0xff]  ;;  %2247 = vmatpush3.msra.mxu0 %v614_v1  ;;  %v645_v6 = vld [vmem:[%s3727_s2 + $0x170] sm:$0xff]  ;;  %v612_v7 = vld [vmem:[%s3727_s2 + $0x68] sm:$0xff]  ;;  %v579_v42 = vshrl.u32 %v578_v33, 7  ;;  %vm1010_vm9 = vcmask 7168   ;;  %s568_s19 = scalar_lea.vmem [#allocation16], %s2083_s6 }
  0x7e   : > { %2391 = vmatprep.subr.mxu1 %v646_v4  ;;  %2248 = vmatprep.subr.mxu0 %v629_v2  ;;  %v644_v8 = vld [vmem:[%s3727_s2 + $0x168] sm:$0xff]  ;;  %v627_v9 = vld [vmem:[%s3727_s2 + $0xe0] sm:$0xff]  ;;  %v626_v12 = vld [vmem:[%s3727_s2 + $0xd8] sm:$0xff]  ;;  %s3787_s17 = sld [smem:[#allocation26_spill]]  ;;  %s1895_s6 = sshll.u32 %s568_s19, 4  ;;  %s3639_s6 = int_to_ptr.vmem [resolvable:$true] %s1895_s6 }
  0x7f   : > { %2392 = vmatpush3.msra.mxu1 %v646_v4  ;;  %2249 = vmatpush3.msra.mxu0 %v613_v3  ;;  %v611_v10 = vld [vmem:[%s3727_s2 + $0x60] sm:$0xff]  ;;  %v610_v13 = vld [vmem:[%s3727_s2 + $0x58] sm:$0xff]  ;;  %v625_v15 = vld [vmem:[%s3727_s2 + $0xd0] sm:$0xff]  ;;  %vm585_vm0 = vcmp.lt.s32.totalorder %v579_v42, 1  ;;  %vm594_vm1 = vcmp.lt.s32.totalorder %v579_v42, 7  ;;  %v580_v55 = vadd.s32 8, %v579_v42 }
  0x80   : > { %2393 = vmatprep.subr.mxu1 %v645_v6  ;;  %2250 = vmatprep.subr.mxu0 %v628_v5  ;;  %v643_v11 = vld [vmem:[%s3727_s2 + $0x160] sm:$0xff]  ;;  %v642_v14 = vld [vmem:[%s3727_s2 + $0x158] sm:$0xff]  ;;  %v609_v16 = vld [vmem:[%s3727_s2 + $0x50] sm:$0xff]  ;;  %vm581_vm2 = vcmp.ge.s32.totalorder %v579_v42, 1  ;;  %s3789_s22 = sld [smem:[#allocation38_spill]]  ;;  %s1862_s23 = scalar_lea.sflag [#allocation17], %s3230_s0 }
  0x81   : > { %2394 = vmatpush3.msra.mxu1 %v645_v6  ;;  %2251 = vmatpush3.msra.mxu0 %v612_v7  ;;  %v641_v17 = vld [vmem:[%s3727_s2 + $0x150] sm:$0xff]  ;;  %v624_v18 = vld [vmem:[%s3727_s2 + $0xc8] sm:$0xff]  ;;  %v623_v21 = vld [vmem:[%s3727_s2 + $0xc0] sm:$0xff]  ;;  %vm591_vm3 = vcmp.le.s32.totalorder %v580_v55, 14  ;;  %s2859_s12 = scalar_lea.vmem %s3639_s6, 256  ;;  %s2995_s16 = smov [#allocation16]  }
  0x82   : > { %2395 = vmatprep.subr.mxu1 %v644_v8  ;;  %2252 = vmatprep.subr.mxu0 %v627_v9  ;;  %v608_v19 = vld [vmem:[%s3727_s2 + $0x48] sm:$0xff]  ;;  %v607_v22 = vld [vmem:[%s3727_s2 + $0x40] sm:$0xff]  ;;  %v622_v24 = vld [vmem:[%s3727_s2 + $0xb8] sm:$0xff]  ;;  %p2860_p4 = scmp.ne.s32.totalorder %s3639_s6, %s2859_s12 }
  0x83   : > { %2396 = vmatpush3.msra.mxu1 %v644_v8  ;;  %2253 = vmatpush3.msra.mxu0 %v611_v10  ;;  %v640_v20 = vld [vmem:[%s3727_s2 + $0x148] sm:$0xff]  ;;  %v639_v23 = vld [vmem:[%s3727_s2 + $0x140] sm:$0xff]  ;;  %v606_v25 = vld [vmem:[%s3727_s2 + $0x38] sm:$0xff] }
  0x84   : > { %2397 = vmatprep.subr.mxu1 %v643_v11  ;;  %2254 = vmatprep.subr.mxu0 %v626_v12  ;;  %v638_v26 = vld [vmem:[%s3727_s2 + $0x138] sm:$0xff]  ;;  %v621_v27 = vld [vmem:[%s3727_s2 + $0xb0] sm:$0xff]  ;;  %v620_v30 = vld [vmem:[%s3727_s2 + $0xa8] sm:$0xff]  ;;  %s2188_s8 = sshll.u32 %s3787_s17, 8  ;;  %p2861_p11 = pnand %p2860_p4, %p3176_p13 }
  0x85   : > { %2398 = vmatpush3.msra.mxu1 %v643_v11  ;;  %2255 = vmatpush3.msra.mxu0 %v610_v13  ;;  %v605_v28 = vld [vmem:[%s3727_s2 + $0x30] sm:$0xff]  ;;  %v604_v31 = vld [vmem:[%s3727_s2 + $0x28] sm:$0xff]  ;;  %v619_v34 = vld [vmem:[%s3727_s2 + $0xa0] sm:$0xff] }
  0x86   : > { %2399 = vmatprep.subr.mxu1 %v642_v14  ;;  %2256 = vmatprep.subr.mxu0 %v625_v15  ;;  %v637_v29 = vld [vmem:[%s3727_s2 + $0x130] sm:$0xff]  ;;  %v636_v32 = vld [vmem:[%s3727_s2 + $0x128] sm:$0xff]  ;;  %v603_v35 = vld [vmem:[%s3727_s2 + $0x20] sm:$0xff]  ;;  %s3645_s21 = scalar_lea.hbm %s3789_s22, %s2188_s8  ;;  %p2862_p10 = pneg %p2861_p11 }
  0x87   : > { %2400 = vmatpush3.msra.mxu1 %v642_v14  ;;  %2257 = vmatpush3.msra.mxu0 %v609_v16  ;;  %v635_v36 = vld [vmem:[%s3727_s2 + $0x120] sm:$0xff]  ;;  %v618_v37 = vld [vmem:[%s3727_s2 + $0x98] sm:$0xff]  ;;  %v617_v43 = vld [vmem:[%s3727_s2 + $0x90] sm:$0xff] }
  0x88   : > { %2401 = vmatprep.subr.mxu1 %v641_v17  ;;  %2258 = vmatprep.subr.mxu0 %v624_v18  ;;  %v602_v38 = vld [vmem:[%s3727_s2 + $0x18] sm:$0xff]  ;;  %v601_v44 = vld [vmem:[%s3727_s2 + $0x10] sm:$0xff]  ;;  %v616_v46 = vld [vmem:[%s3727_s2 + $0x88] sm:$0xff] }
  0x89   : > { %2402 = vmatpush3.msra.mxu1 %v641_v17  ;;  %2259 = vmatpush3.msra.mxu0 %v608_v19  ;;  %v634_v39 = vld [vmem:[%s3727_s2 + $0x118] sm:$0xff]  ;;  %v633_v45 = vld [vmem:[%s3727_s2 + $0x110] sm:$0xff]  ;;  %v600_v49 = vld [vmem:[%s3727_s2 + $0x8] sm:$0xff]  ;;  %v3430_v17 = vand.u32 127, %v578_v33 }
  0x8a   : > { %2403 = vmatprep.subr.mxu1 %v640_v20  ;;  %2260 = vmatprep.subr.mxu0 %v623_v21  ;;  %v576_v40 = vld [vmem:[%s3236_s27] sm:$0xff]  ;;  %v577_v41 = vld [vmem:[%s3236_s27 + $0x8] sm:$0xff]  ;;  %v2992_v21 = vmov 0   ;;  %s3786_s27 = sld [smem:[#allocation35_spill]] }
  0x8b   : > { %2404 = vmatpush3.msra.mxu1 %v640_v20  ;;  %2261 = vmatpush3.msra.mxu0 %v607_v22  ;;  %v583_v47 = vrot.slane %v576_v40, 7  ;;  %v584_v48 = vrot.slane %v577_v41, 7  ;;  %v615_v50 = vld [vmem:[%s3727_s2 + $0x80] sm:$0xff]  ;;  %v592_v51 = vrot.slane %v576_v40, 1  ;;  %v632_v52 = vld [vmem:[%s3727_s2 + $0x108] sm:$0xff]  ;;  %v593_v53 = vrot.slane %v577_v41, 1 }
  0x8c   : > { %2405 = vmatprep.subr.mxu1 %v639_v23  ;;  %2262 = vmatprep.subr.mxu0 %v622_v24  ;;  %v599_v54 = vld [vmem:[%s3727_s2] sm:$0xff]  ;;  %v3408_v59 = vld [vmem:[%s3244_s18 + $0x18] sm:$0xff]  ;;  %v3417_v0 = vld [vmem:[%s3244_s18 + $0x10] sm:$0xff]  ;;  %vm1042_vm4 = vcmp.le.s32.totalorder %v3430_v17, 126  ;;  %vm1029_vm6 = vcmp.ge.s32.totalorder %v3430_v17, 1  ;;  %vm1825_vm10 = vcmp.lt.s32.totalorder %v3430_v17, 8 }
  0x8d   : > { %2406 = vmatpush3.msra.mxu1 %v639_v23  ;;  %2263 = vmatpush3.msra.mxu0 %v606_v25  ;;  %v587_v56 = vsel %vm585_vm0, %v584_v48, %v583_v47  ;;  %v631_v57 = vld [vmem:[%s3727_s2 + $0x100] sm:$0xff]  ;;  %v595_v58 = vsel %vm594_vm1, %v592_v51, %v593_v53  ;;  %v596_v60 = vsel %vm594_vm1, %v593_v53, %v592_v51  ;;  %v821_v63 = vld [vmem:[#allocation11 + $0x78] sm:$0xff]  ;;  %v820_v1 = vld [vmem:[#allocation11 + $0x70] sm:$0xff] }
  0x8e   : > { %2407 = vmatprep.subr.mxu1 %v638_v26  ;;  %2264 = vmatprep.subr.mxu0 %v621_v27  ;;  %v3412_v61 = vld [vmem:[%s3244_s18 + $0x8] sm:$0xff]  ;;  %v586_v62 = vsel %vm585_vm0, %v583_v47, %v584_v48  ;;  %v3421_v2 = vld [vmem:[%s3244_s18] sm:$0xff]  ;;  %v817_v5 = vld [vmem:[#allocation11 + $0x58] sm:$0xff] }
  0x8f   : > { %2408 = vmatpush3.msra.mxu1 %v638_v26  ;;  %2265 = vmatpush3.msra.mxu0 %v605_v28  ;;  %v819_v3 = vld [vmem:[#allocation11 + $0x68] sm:$0xff]  ;;  %v818_v4 = vld [vmem:[#allocation11 + $0x60] sm:$0xff]  ;;  %v816_v6 = vld [vmem:[#allocation11 + $0x50] sm:$0xff] }
  0x90   : > { %2409 = vmatprep.subr.mxu1 %v637_v29  ;;  %2266 = vmatprep.subr.mxu0 %v620_v30  ;;  %v815_v7 = vld [vmem:[#allocation11 + $0x48] sm:$0xff]  ;;  %v814_v8 = vld [vmem:[#allocation11 + $0x40] sm:$0xff]  ;;  %v813_v9 = vld [vmem:[#allocation11 + $0x38] sm:$0xff] }
  0x91   : > { %2410 = vmatpush3.msra.mxu1 %v637_v29  ;;  %2267 = vmatpush3.msra.mxu0 %v604_v31  ;;  %v812_v10 = vld [vmem:[#allocation11 + $0x30] sm:$0xff]  ;;  %v811_v11 = vld [vmem:[#allocation11 + $0x28] sm:$0xff]  ;;  %v810_v12 = vld [vmem:[#allocation11 + $0x20] sm:$0xff] }
  0x92   : > { %2411 = vmatprep.subr.mxu1 %v636_v32  ;;  %2268 = vmatprep.subr.mxu0 %v619_v34  ;;  %v809_v13 = vld [vmem:[#allocation11 + $0x18] sm:$0xff]  ;;  %v808_v14 = vld [vmem:[#allocation11 + $0x10] sm:$0xff]  ;;  %v807_v15 = vld [vmem:[#allocation11 + $0x8] sm:$0xff] }
  0x93   : > { %2412 = vmatpush3.msra.mxu1 %v636_v32  ;;  %2269 = vmatpush3.msra.mxu0 %v603_v35  ;;  %v806_v16 = vld [vmem:[#allocation11] sm:$0xff]  ;;  %v1069_v19 = vld [vmem:[%s3734_s9 + $0x30] sm:$0xff]  ;;  %v1068_v23 = vld [vmem:[%s3734_s9 + $0x28] sm:$0xff] }
  0x94   : > { %2413 = vmatprep.subr.mxu1 %v635_v36  ;;  %2270 = vmatprep.subr.mxu0 %v618_v37  ;;  %v1070_v18 = vld [vmem:[%s3734_s9 + $0x38] sm:$0xff]  ;;  %v1067_v22 = vld [vmem:[%s3734_s9 + $0x20] sm:$0xff]  ;;  %v1065_v24 = vld [vmem:[%s3734_s9 + $0x10] sm:$0xff] }
  0x95   : > { %2414 = vmatpush3.msra.mxu1 %v635_v36  ;;  %2271 = vmatpush3.msra.mxu0 %v602_v38  ;;  %v1066_v25 = vld [vmem:[%s3734_s9 + $0x18] sm:$0xff]  ;;  %v920_v27 = vld [vmem:[#allocation12 + $0x70] sm:$0xff]  ;;  %v919_v28 = vld [vmem:[#allocation12 + $0x68] sm:$0xff] }
  0x96   : > { %2415 = vmatprep.subr.mxu1 %v634_v39  ;;  %2272 = vmatprep.subr.mxu0 %v617_v43  ;;  %v921_v26 = vld [vmem:[#allocation12 + $0x78] sm:$0xff]  ;;  %v1063_v29 = vld [vmem:[%s3734_s9] sm:$0xff]  ;;  %v1064_v30 = vld [vmem:[%s3734_s9 + $0x8] sm:$0xff] }
  0x97   : > { %2416 = vmatpush3.msra.mxu1 %v634_v39  ;;  %2273 = vmatpush3.msra.mxu0 %v601_v44  ;;  %v918_v31 = vld [vmem:[#allocation12 + $0x60] sm:$0xff]  ;;  %v917_v32 = vld [vmem:[#allocation12 + $0x58] sm:$0xff]  ;;  %v916_v35 = vld [vmem:[#allocation12 + $0x50] sm:$0xff] }
  0x98   : > { %2417 = vmatprep.subr.mxu1 %v633_v45  ;;  %2274 = vmatprep.subr.mxu0 %v616_v46  ;;  %v1280_v33 = vld [vmem:[%s3736_s11 + $0x78] sm:$0xff]  ;;  %v1279_v34 = vld [vmem:[%s3736_s11 + $0x70] sm:$0xff]  ;;  %v915_v36 = vld [vmem:[#allocation12 + $0x48] sm:$0xff] }
  0x99   : > { %718 = vmatprep.mubr.f32.mxu0 %v576_v40  ;;  %2275 = vmatpush3.msra.mxu0 %v600_v49  ;;  %v1278_v37 = vld [vmem:[%s3736_s11 + $0x68] sm:$0xff]  ;;  %v1277_v38 = vld [vmem:[%s3736_s11 + $0x60] sm:$0xff]  ;;  %v913_v40 = vld [vmem:[#allocation12 + $0x38] sm:$0xff] }
  0x9a   : > { %2418 = vmatpush3.msra.mxu1 %v633_v45  ;;  %2276 = vmatprep.subr.mxu0 %v615_v50  ;;  %v914_v39 = vld [vmem:[#allocation12 + $0x40] sm:$0xff]  ;;  %v1275_v42 = vld [vmem:[%s3736_s11 + $0x50] sm:$0xff]  ;;  %v911_v44 = vld [vmem:[#allocation12 + $0x28] sm:$0xff] }
  0x9b   : > { %2419 = vmatprep.subr.mxu1 %v632_v52  ;;  %2277 = vmatpush3.msra.mxu0 %v599_v54  ;;  %v912_v43 = vld [vmem:[#allocation12 + $0x30] sm:$0xff]  ;;  %v1273_v46 = vld [vmem:[%s3736_s11 + $0x40] sm:$0xff]  ;;  %v1272_v48 = vld [vmem:[%s3736_s11 + $0x38] sm:$0xff] }
  0x9c   : > { %2420 = vmatpush3.msra.mxu1 %v632_v52  ;;  %2091 = vmatmul.mubr.msk.f32.vlgmr.msra.gmra.mxu0 %vm581_vm2, %v587_v56  ;;  %v1274_v45 = vld [vmem:[%s3736_s11 + $0x48] sm:$0xff]  ;;  %v910_v47 = vld [vmem:[#allocation12 + $0x20] sm:$0xff]  ;;  %v1271_v49 = vld [vmem:[%s3736_s11 + $0x30] sm:$0xff] }
  0x9d   : > { %2421 = vmatprep.subr.mxu1 %v631_v57  ;;  %723 = vmatprep.mubr.f32.mxu0 %v577_v41  ;;  %v1276_v41 = vld [vmem:[%s3736_s11 + $0x58] sm:$0xff]  ;;  %v1270_v50 = vld [vmem:[%s3736_s11 + $0x28] sm:$0xff]  ;;  %v1269_v51 = vld [vmem:[%s3736_s11 + $0x20] sm:$0xff] }
  0x9e   : > { %2422 = vmatpush3.msra.mxu1 %v631_v57  ;;  %2423 = vmatprep.mubr.f32.mxu1 %v595_v58  ;;  %v1268_v52 = vld [vmem:[%s3736_s11 + $0x18] sm:$0xff]  ;;  %v1267_v53 = vld [vmem:[%s3736_s11 + $0x10] sm:$0xff]  ;;  %v1266_v54 = vld [vmem:[%s3736_s11 + $0x8] sm:$0xff] }
  0x9f   : > { %1049 = vrot.lane.b32.xlu0 %v3408_v59, %s2990_s15  ;;  %2424 = vmatmul.mubr.msk.f32.vlgmr.msra.gmra.mxu1 %vm591_vm3, %v596_v60  ;;  %v1265_v55 = vld [vmem:[%s3736_s11] sm:$0xff] }
  0xa0   : > { %1045 = vrot.lane.b32.xlu1 %v3412_v61, %s2990_s15  ;;  %724 = vmatmul.mubr.f32.gmra.mxu0 %v586_v62  ;;  %v2090_v58 = vld [vmem:[%s3728_s3] ss:$0 sm:$0xff] }
  0xa1   : > { %2426 = vmatprep.subr.mxu0 %v821_v63  ;;  %2707 = vset.pattern.permute.xlu1 %v2992_v21 }
  0xa2   : > { %2427 = vmatpush3.msra.mxu0 %v821_v63  ;;  %2706 = vset.pattern.permute.xlu0 %v2992_v21  ;;  %v1061_v21 = vld [vmem:[#allocation14 + $0x30] sm:$0xff] }
  0xa3   : > { %1047 = vrot.lane.b32.xlu0 %v3417_v0, %s2990_s15  ;;  %2428 = vmatprep.subr.mxu0 %v820_v1 }
  0xa4   : > { %1043 = vrot.lane.b32.xlu1 %v3421_v2, %s2990_s15  ;;  %2429 = vmatpush3.msra.mxu0 %v820_v1  ;;  %s2863_s15 = sshll.u32 %s2995_s16, 4  ;;  %s2864_s15 = int_to_ptr.vmem [resolvable:$false] %s2863_s15 }
  0xa5   : > { %2430 = vmatprep.subr.mxu0 %v819_v3  ;;  %2461 = vmatprep.subr.mxu1 %v921_v26  ;;  %p2866_p7 = scmp.lt.s32.totalorder %s3639_s6, %s2864_s15 }
  0xa6   : > { %2431 = vmatpush3.msra.mxu0 %v819_v3  ;;  %2462 = vmatpush3.msra.mxu1 %v921_v26  ;;  %v906_v26 = vld [vmem:[#allocation12] sm:$0xff] }
  0xa7   : > { %1036 = vrot.lane.b32.xlu0 %v3408_v59, %s2991_s24  ;;  %2432 = vmatprep.subr.mxu0 %v818_v4 }
  0xa8   : > { %1034 = vrot.lane.b32.xlu1 %v3417_v0, %s2991_s24  ;;  %2433 = vmatpush3.msra.mxu0 %v818_v4 }
  0xa9   : > { %2434 = vmatprep.subr.mxu0 %v817_v5  ;;  %2463 = vmatprep.subr.mxu1 %v920_v27 }
  0xaa   : > { %2435 = vmatpush3.msra.mxu0 %v817_v5  ;;  %2464 = vmatpush3.msra.mxu1 %v920_v27  ;;  %v2093_v27 = vld [vmem:[%s3730_s5] ss:$0 sm:$0xff] }
  0xab   : > { %1032 = vrot.lane.b32.xlu0 %v3412_v61, %s2991_s24  ;;  %2436 = vmatprep.subr.mxu0 %v816_v6 }
  0xac   : > { %1030 = vrot.lane.b32.xlu1 %v3421_v2, %s2991_s24  ;;  %2437 = vmatpush3.msra.mxu0 %v816_v6  ;;  %s2865_s24 = scalar_lea.vmem %s2864_s15, 512 }
  0xad   : > { %2438 = vmatprep.subr.mxu0 %v815_v7  ;;  %2465 = vmatprep.subr.mxu1 %v919_v28  ;;  %p2867_p1 = scmp.lt.s32.totalorder %s2865_s24, %s2859_s12 }
  0xae   : > { %2439 = vmatpush3.msra.mxu0 %v815_v7  ;;  %2466 = vmatpush3.msra.mxu1 %v919_v28 }
  0xaf   : > { %2440 = vmatprep.subr.mxu0 %v814_v8  ;;  %1108 = vperm.xlu0 %2706, %v1070_v18   ;;  %p2868_p12 = por %p2867_p1, %p2866_p7 }
  0xb0   : > { %2441 = vmatpush3.msra.mxu0 %v814_v8  ;;  %1103 = vperm.xlu1 %2707, %v1069_v19   ;;  %v1057_v19 = vld [vmem:[#allocation14 + $0x10] sm:$0xff] }
  0xb1   : > { %2442 = vmatprep.subr.mxu0 %v813_v9  ;;  %2467 = vmatprep.subr.mxu1 %v918_v31  ;;  %p2869_p9 = pnand %p2868_p12, %p2862_p10 }
  0xb2   : > { %2443 = vmatpush3.msra.mxu0 %v813_v9  ;;  %2468 = vmatpush3.msra.mxu1 %v918_v31 }
  0xb3   : > { %2444 = vmatprep.subr.mxu0 %v812_v10  ;;  %1093 = vperm.xlu0 %2706, %v1067_v22   ;;  %v1062_v22 = vld [vmem:[#allocation14 + $0x38] sm:$0xff] }
  0xb4   : > { %2445 = vmatpush3.msra.mxu0 %v812_v10  ;;  %1098 = vperm.xlu1 %2707, %v1068_v23   ;;  %v909_v23 = vld [vmem:[#allocation12 + $0x18] sm:$0xff] }
  0xb5   : > { %2446 = vmatprep.subr.mxu0 %v811_v11  ;;  %2469 = vmatprep.subr.mxu1 %v917_v32 }
  0xb6   : > { %2447 = vmatpush3.msra.mxu0 %v811_v11  ;;  %2470 = vmatpush3.msra.mxu1 %v917_v32 }
  0xb7   : > { %2448 = vmatprep.subr.mxu0 %v810_v12  ;;  %1083 = vperm.xlu0 %2706, %v1065_v24   ;;  %v908_v24 = vld [vmem:[#allocation12 + $0x10] sm:$0xff] }
  0xb8   : > { %2449 = vmatpush3.msra.mxu0 %v810_v12  ;;  %1088 = vperm.xlu1 %2707, %v1066_v25   ;;  %v1055_v12 = vld [vmem:[#allocation14] sm:$0xff]  ;;  %v907_v25 = vld [vmem:[#allocation12 + $0x8] sm:$0xff] }
  0xb9   : > { %2450 = vmatprep.subr.mxu0 %v809_v13  ;;  %2471 = vmatprep.subr.mxu1 %v916_v35 }
  0xba   : > { %2451 = vmatpush3.msra.mxu0 %v809_v13  ;;  %2472 = vmatpush3.msra.mxu1 %v916_v35 }
  0xbb   : > { %2452 = vmatprep.subr.mxu0 %v808_v14  ;;  %1073 = vperm.xlu0 %2706, %v1063_v29  }
  0xbc   : > { %2453 = vmatpush3.msra.mxu0 %v808_v14  ;;  %1078 = vperm.xlu1 %2707, %v1064_v30  }
  0xbd   : > { %2454 = vmatprep.subr.mxu0 %v807_v15  ;;  %2473 = vmatprep.subr.mxu1 %v915_v36 }
  0xbe   : > { %2455 = vmatpush3.msra.mxu0 %v807_v15  ;;  %2474 = vmatpush3.msra.mxu1 %v915_v36 }
  0xbf   : > { %2456 = vmatprep.subr.mxu0 %v806_v16  ;;  %1358 = vperm.xlu0 %2706, %v1280_v33  }
  0xc0   : > { %2457 = vmatpush3.msra.mxu0 %v806_v16  ;;  %1353 = vperm.xlu1 %2707, %v1279_v34   ;;  %v1249_v34 = vld [vmem:[%s3735_s10] sm:$0xff] }
  0xc1   : > { %2475 = vmatprep.subr.mxu1 %v914_v39 }
  0xc2   : > { %2476 = vmatpush3.msra.mxu1 %v914_v39 }
  0xc3   : > { %1348 = vperm.xlu0 %2706, %v1278_v37   ;;  %2477 = vmatprep.subr.mxu1 %v913_v40 }
  0xc4   : > { %1343 = vperm.xlu1 %2707, %v1277_v38   ;;  %2478 = vmatpush3.msra.mxu1 %v913_v40 }
  0xc5   : > { %2479 = vmatprep.subr.mxu1 %v912_v43 }
  0xc6   : > { %2480 = vmatpush3.msra.mxu1 %v912_v43 }
  0xc7   : > { %1338 = vperm.xlu0 %2706, %v1276_v41   ;;  %2481 = vmatprep.subr.mxu1 %v911_v44 }
  0xc8   : > { %1333 = vperm.xlu1 %2707, %v1275_v42   ;;  %2482 = vmatpush3.msra.mxu1 %v911_v44 }
  0xc9   : > { %2483 = vmatprep.subr.mxu1 %v910_v47 }
  0xca   : > { %2484 = vmatpush3.msra.mxu1 %v910_v47 }
  0xcb   : > { %1328 = vperm.xlu0 %2706, %v1274_v45   ;;  %2485 = vmatprep.subr.mxu1 %v909_v23 }
  0xcc   : > { %1323 = vperm.xlu1 %2707, %v1273_v46   ;;  %2486 = vmatpush3.msra.mxu1 %v909_v23 }
  0xcd   : > { %2487 = vmatprep.subr.mxu1 %v908_v24 }
  0xce   : > { %2488 = vmatpush3.msra.mxu1 %v908_v24 }
  0xcf   : > { %1318 = vperm.xlu0 %2706, %v1272_v48   ;;  %2489 = vmatprep.subr.mxu1 %v907_v25 }
  0xd0   : > { %1313 = vperm.xlu1 %2707, %v1271_v49   ;;  %2490 = vmatpush3.msra.mxu1 %v907_v25 }
  0xd1   : > { %2491 = vmatprep.subr.mxu1 %v906_v26 }
  0xd2   : > { %2492 = vmatpush3.msra.mxu1 %v906_v26 }
  0xd3   : > { %1308 = vperm.xlu0 %2706, %v1270_v50  }
  0xd4   : > { %1303 = vperm.xlu1 %2707, %v1269_v51  }
  0xd7   : > { %1298 = vperm.xlu0 %2706, %v1268_v52  }
  0xd8   : > { %1293 = vperm.xlu1 %2707, %v1267_v53  }
  0xdb   : > { %1288 = vperm.xlu0 %2706, %v1266_v54  }
  0xdc   : > { %1283 = vperm.xlu1 %2707, %v1265_v55  }
 0x111   : > { %v3439_v20 = vpop.permute.xlu0 %1049 }
 0x112   : > { %2496 = vmatprep.subr.msk.mxu0 %vm1042_vm4, %v3439_v20  ;;  %v1046_v10 = vpop.permute.xlu1 %1045 }
 0x115   : > { %v1048_v13 = vpop.permute.xlu0 %1047 }
 0x116   : > { %v1044_v14 = vpop.permute.xlu1 %1043 }
 0x119   : > { %v1037_v15 = vpop.permute.xlu0 %1036 }
 0x11a   : > { %v1035_v16 = vpop.permute.xlu1 %1034 }
 0x11d   : > { %v1033_v18 = vpop.permute.xlu0 %1032 }
 0x12a   : > { %v1109_v39 = vpop.permute.xlu0 %1108 }
 0x12e   : > { %v1094_v44 = vpop.permute.xlu0 %1093 }
 0x132   : > { %v1084_v54 = vpop.permute.xlu0 %1083 }
 0x15c   : > { %v2278_v56 = vpop.f32.mrf.mxu0 }
 0x15e   : > { %v2279_v57 = vpop.f32.mrf.mxu0 }
 0x15f   : > { %v2280_v60 = vadd.f32 %v2279_v57, %v2278_v56  ;;  %v2425_v62 = vpop.f32.mrf.mxu1 }
 0x160   : > { %v2281_v63 = vpop.f32.mrf.mxu0 }
 0x161   : > { %v721_v1 = vadd.f32 %v2280_v60, %v2090_v58  ;;  %v795_v3 = vpop.f32.mrf.mxu1 }
 0x162   : > { %v2282_v4 = vpop.f32.mrf.mxu0 }
 0x163   : > { %v2283_v5 = vadd.f32 %v2282_v4, %v2281_v63  ;;  %v796_v6 = vadd.f32 %v795_v3, %v721_v1  ;;  %v1074_v1 = vpop.permute.xlu0 %1073 }
 0x165   : > { %v726_v7 = vadd.f32 %v2283_v5, %v2090_v58  ;;  %v804_v8 = vmax.f32 %v796_v6, 0.0 }
 0x167   : > { %v801_v9 = vadd.f32 %v2425_v62, %v726_v7  ;;  %2458 = vmatprep.mubr.f32.mxu0 %v804_v8  ;;  %v1250_v7 = vld [vmem:[%s3735_s10 + $0x8] sm:$0xff]  ;;  %v1251_v8 = vld [vmem:[%s3735_s10 + $0x10] sm:$0xff] }
 0x169   : > { %v805_v11 = vmax.f32 %v801_v9, 0.0  ;;  %v1252_v9 = vld [vmem:[%s3735_s10 + $0x18] sm:$0xff] }
 0x16b   : > { %2459 = vmatmul.mubr.f32.vlgmr.msra.gmra.mxu0 %v805_v11  ;;  %v1254_v11 = vld [vmem:[%s3735_s10 + $0x28] sm:$0xff] }
 0x16c   : > { %2497 = vmatpush3.msk.msra.mxu0 %vm1042_vm4, %v3439_v20  ;;  %2520 = vmatprep.mubr.msk.f32.mxu0 %vm1111_vm5, %v1055_v12  ;;  %v1059_v20 = vld [vmem:[#allocation14 + $0x20] sm:$0xff]  ;;  %v1255_v12 = vld [vmem:[%s3735_s10 + $0x30] sm:$0xff] }
 0x16d   : > { %2498 = vmatprep.subr.msk.mxu0 %vm1042_vm4, %v1048_v13 }
 0x16e   : > { %2499 = vmatpush3.msk.msra.mxu0 %vm1042_vm4, %v1048_v13  ;;  %v1256_v13 = vld [vmem:[%s3735_s10 + $0x38] sm:$0xff] }
 0x16f   : > { %2500 = vmatprep.subr.msk.mxu0 %vm1042_vm4, %v1046_v10 }
 0x170   : > { %2501 = vmatpush3.msk.msra.mxu0 %vm1042_vm4, %v1046_v10  ;;  %v1253_v10 = vld [vmem:[%s3735_s10 + $0x20] sm:$0xff] }
 0x171   : > { %2502 = vmatprep.subr.msk.mxu0 %vm1042_vm4, %v1044_v14 }
 0x172   : > { %2503 = vmatpush3.msk.msra.mxu0 %vm1042_vm4, %v1044_v14  ;;  %v1257_v14 = vld [vmem:[%s3735_s10 + $0x40] sm:$0xff] }
 0x173   : > { %2504 = vmatprep.subr.mxu0 %v3408_v59 }
 0x174   : > { %2505 = vmatpush3.msra.mxu0 %v3408_v59  ;;  %v1031_v59 = vpop.permute.xlu1 %1030 }
 0x175   : > { %2506 = vmatprep.subr.mxu0 %v3417_v0 }
 0x176   : > { %2507 = vmatpush3.msra.mxu0 %v3417_v0  ;;  %v1056_v0 = vld [vmem:[#allocation14 + $0x8] sm:$0xff] }
 0x177   : > { %2508 = vmatprep.subr.mxu0 %v3412_v61 }
 0x178   : > { %2509 = vmatpush3.msra.mxu0 %v3412_v61  ;;  %v1058_v61 = vld [vmem:[#allocation14 + $0x18] sm:$0xff]  ;;  %v1104_v37 = vpop.permute.xlu1 %1103 }
 0x179   : > { %2510 = vmatprep.subr.mxu0 %v3421_v2 }
 0x17a   : > { %2511 = vmatpush3.msra.mxu0 %v3421_v2  ;;  %v1060_v2 = vld [vmem:[#allocation14 + $0x28] sm:$0xff] }
 0x17b   : > { %2512 = vmatprep.subr.msk.mxu0 %vm1029_vm6, %v1037_v15 }
 0x17c   : > { %2513 = vmatpush3.msk.msra.mxu0 %vm1029_vm6, %v1037_v15  ;;  %v1099_v42 = vpop.permute.xlu1 %1098  ;;  %v1258_v15 = vld [vmem:[%s3735_s10 + $0x48] sm:$0xff] }
 0x17d   : > { %2514 = vmatprep.subr.msk.mxu0 %vm1029_vm6, %v1035_v16 }
 0x17e   : > { %2515 = vmatpush3.msk.msra.mxu0 %vm1029_vm6, %v1035_v16  ;;  %v1259_v16 = vld [vmem:[%s3735_s10 + $0x50] sm:$0xff] }
 0x17f   : > { %2516 = vmatprep.subr.msk.mxu0 %vm1029_vm6, %v1033_v18 }
 0x180   : > { %2517 = vmatpush3.msk.msra.mxu0 %vm1029_vm6, %v1033_v18  ;;  %v1089_v51 = vpop.permute.xlu1 %1088  ;;  %v1260_v18 = vld [vmem:[%s3735_s10 + $0x58] sm:$0xff] }
 0x181   : > { %2518 = vmatprep.subr.msk.mxu0 %vm1029_vm6, %v1031_v59 }
 0x182   : > { %2519 = vmatpush3.msk.msra.mxu0 %vm1029_vm6, %v1031_v59  ;;  %v1261_v59 = vld [vmem:[%s3735_s10 + $0x60] sm:$0xff] }
 0x183   : > { %2521 = vmatmul.mubr.msk.f32.vlgmr.msra.gmra.mxu0 %vm1111_vm5, %v1056_v0  ;;  %v1262_v0 = vld [vmem:[%s3735_s10 + $0x68] sm:$0xff] }
 0x184   : > { %2523 = vmatprep.mubr.msk.f32.mxu0 %vm1111_vm5, %v1057_v19  ;;  %v1079_v60 = vpop.permute.xlu1 %1078  ;;  %v1263_v19 = vld [vmem:[%s3735_s10 + $0x70] sm:$0xff] }
 0x187   : > { %2524 = vmatmul.mubr.msk.f32.gmra.mxu0 %vm1111_vm5, %v1058_v61  ;;  %v1264_v61 = vld [vmem:[%s3735_s10 + $0x78] sm:$0xff] }
 0x188   : > { %2526 = vmatprep.mubr.msk.f32.mxu0 %vm1111_vm5, %v1059_v20  ;;  %v2993_v20 = vmov 0.0  }
 0x18b   : > { %2527 = vmatmul.mubr.msk.f32.gmra.mxu0 %vm1111_vm5, %v1060_v2  ;;  %v2094_v2 = vld [vmem:[%s3786_s27] ss:$0 sm:$0xff] }
 0x18c   : > { %2529 = vmatprep.mubr.msk.f32.mxu0 %vm1111_vm5, %v1061_v21 }
 0x18f   : > { %2530 = vmatmul.mubr.msk.f32.gmra.mxu0 %vm1111_vm5, %v1062_v22 }
 0x22b   : > { %v2460_v28 = vpop.f32.mrf.mxu0 }
 0x22c   : > { %v901_v29 = vadd.f32 %v2460_v28, %v2093_v27  ;;  %v3617_v28 = vpop.permute.xlu0 %1358 }
 0x22d   : > { %v895_v30 = vpop.f32.mrf.mxu0 }
 0x22e   : > { %v896_v31 = vadd.f32 %v2093_v27, %v895_v30  ;;  %v905_v33 = vmax.f32 %v901_v29, 0.0  ;;  %v3619_v29 = vpop.permute.xlu1 %1353 }
 0x230   : > { %v904_v32 = vmax.f32 %v896_v31, 0.0  ;;  %v3621_v30 = vpop.permute.xlu0 %1348 }
 0x232   : > { %2493 = vmatprep.mubr.f32.mxu1 %v904_v32  ;;  %v3623_v31 = vpop.permute.xlu1 %1343 }
 0x233   : > { %2494 = vmatmul.mubr.f32.vlgmr.msra.gmra.mxu1 %v905_v33 }
 0x234   : > { %2548 = vmatprep.mubr.msk.f32.mxu1 %vm1361_vm7, %v1249_v34  ;;  %v1339_v32 = vpop.permute.xlu0 %1338 }
 0x236   : > { %v1334_v33 = vpop.permute.xlu1 %1333 }
 0x238   : > { %v1329_v34 = vpop.permute.xlu0 %1328 }
 0x243   : > { %v2522_v35 = vpop.f32.mrf.mxu0 }
 0x244   : > { %v1208_v62 = vadd.f32 %v2522_v35, %v1079_v60  ;;  %v1324_v35 = vpop.permute.xlu1 %1323 }
 0x245   : > { %v1202_v36 = vpop.f32.mrf.mxu0 }
 0x246   : > { %v1203_v3 = vadd.f32 %v1202_v36, %v1074_v1  ;;  %v1242_v5 = vmax.f32 %v1208_v62, 0.0  ;;  %v1319_v36 = vpop.permute.xlu0 %1318 }
 0x247   : > { %v2525_v38 = vpop.f32.mrf.mxu0 }
 0x248   : > { %v1218_v55 = vadd.f32 %v2525_v38, %v1089_v51  ;;  %v1241_v6 = vmax.f32 %v1203_v3, 0.0 }
 0x249   : > { %v1212_v40 = vpop.f32.mrf.mxu0 }
 0x24a   : > { %v1213_v57 = vadd.f32 %v1212_v40, %v1084_v54  ;;  %v1244_v63 = vmax.f32 %v1218_v55, 0.0  ;;  %v1309_v38 = vpop.permute.xlu0 %1308 }
 0x24b   : > { %v2528_v41 = vpop.f32.mrf.mxu0 }
 0x24c   : > { %v1228_v48 = vadd.f32 %v2528_v41, %v1099_v42  ;;  %v1243_v4 = vmax.f32 %v1213_v57, 0.0 }
 0x24d   : > { %v1222_v43 = vpop.f32.mrf.mxu0 }
 0x24e   : > { %v1223_v52 = vadd.f32 %v1222_v43, %v1094_v44  ;;  %v1246_v56 = vmax.f32 %v1228_v48, 0.0  ;;  %v1299_v40 = vpop.permute.xlu0 %1298 }
 0x24f   : > { %v2531_v45 = vpop.f32.mrf.mxu0 }
 0x250   : > { %v1238_v46 = vadd.f32 %v2531_v45, %v1109_v39  ;;  %v1245_v58 = vmax.f32 %v1223_v52, 0.0 }
 0x251   : > { %v1232_v47 = vpop.f32.mrf.mxu0 }
 0x252   : > { %v1248_v49 = vmax.f32 %v1238_v46, 0.0  ;;  %v1233_v50 = vadd.f32 %v1232_v47, %v1104_v37  ;;  %v1314_v37 = vpop.permute.xlu1 %1313  ;;  %v1289_v43 = vpop.permute.xlu0 %1288 }
 0x254   : > { %v1247_v53 = vmax.f32 %v1233_v50, 0.0  ;;  %2532 = vmatprep.subr.mxu1 %v1248_v49 }
 0x255   : > { %2533 = vmatpush3.msra.mxu1 %v1248_v49 }
 0x256   : > { %2534 = vmatprep.subr.mxu1 %v1247_v53  ;;  %v1304_v39 = vpop.permute.xlu1 %1303 }
 0x257   : > { %2535 = vmatpush3.msra.mxu1 %v1247_v53 }
 0x258   : > { %2536 = vmatprep.subr.mxu1 %v1246_v56 }
 0x259   : > { %2537 = vmatpush3.msra.mxu1 %v1246_v56 }
 0x25a   : > { %2538 = vmatprep.subr.mxu1 %v1245_v58  ;;  %v1294_v41 = vpop.permute.xlu1 %1293 }
 0x25b   : > { %2539 = vmatpush3.msra.mxu1 %v1245_v58 }
 0x25c   : > { %2540 = vmatprep.subr.mxu1 %v1244_v63 }
 0x25d   : > { %2541 = vmatpush3.msra.mxu1 %v1244_v63 }
 0x25e   : > { %2542 = vmatprep.subr.mxu1 %v1243_v4  ;;  %v1284_v44 = vpop.permute.xlu1 %1283 }
 0x25f   : > { %2543 = vmatpush3.msra.mxu1 %v1243_v4 }
 0x260   : > { %2544 = vmatprep.subr.mxu1 %v1242_v5 }
 0x261   : > { %2545 = vmatpush3.msra.mxu1 %v1242_v5 }
 0x262   : > { %2546 = vmatprep.subr.mxu1 %v1241_v6 }
 0x263   : > { %2547 = vmatpush3.msra.mxu1 %v1241_v6 }
 0x264   : > { %2549 = vmatmul.mubr.msk.f32.vlgmr.msra.gmra.mxu1 %vm1361_vm7, %v1250_v7  ;;  %2572 = vmatprep.subr.bf16.mxu1 %v2993_v20 }
 0x265   : > { %2551 = vmatprep.mubr.msk.f32.mxu1 %vm1361_vm7, %v1251_v8 }
 0x268   : > { %2552 = vmatmul.mubr.msk.f32.gmra.mxu1 %vm1361_vm7, %v1252_v9 }
 0x269   : > { %2554 = vmatprep.mubr.msk.f32.mxu1 %vm1361_vm7, %v1253_v10 }
 0x26c   : > { %2555 = vmatmul.mubr.msk.f32.gmra.mxu1 %vm1361_vm7, %v1254_v11 }
 0x26d   : > { %2557 = vmatprep.mubr.msk.f32.mxu1 %vm1361_vm7, %v1255_v12 }
 0x270   : > { %2558 = vmatmul.mubr.msk.f32.gmra.mxu1 %vm1361_vm7, %v1256_v13 }
 0x271   : > { %2560 = vmatprep.mubr.msk.f32.mxu1 %vm1361_vm7, %v1257_v14 }
 0x274   : > { %2561 = vmatmul.mubr.msk.f32.gmra.mxu1 %vm1361_vm7, %v1258_v15 }
 0x275   : > { %2563 = vmatprep.mubr.msk.f32.mxu1 %vm1361_vm7, %v1259_v16 }
 0x278   : > { %2564 = vmatmul.mubr.msk.f32.gmra.mxu1 %vm1361_vm7, %v1260_v18 }
 0x279   : > { %2566 = vmatprep.mubr.msk.f32.mxu1 %vm1361_vm7, %v1261_v59 }
 0x27c   : > { %2567 = vmatmul.mubr.msk.f32.gmra.mxu1 %vm1361_vm7, %v1262_v0 }
 0x27d   : > { %2569 = vmatprep.mubr.msk.f32.mxu1 %vm1361_vm7, %v1263_v19 }
 0x280   : > { %2570 = vmatmul.mubr.msk.f32.gmra.mxu1 %vm1361_vm7, %v1264_v61 }
 0x281   : > { %2588 = vmatprep.mubr.msk.bf16.mxu1 %vm2994_vm8, %v2993_v20 }
 0x2f3   : > { %v2495_v21 = vpop.f32.mrf.mxu1 }
 0x2f4   : > { %v1001_v22 = vadd.f32 %v2495_v21, %v2094_v2 }
 0x2f5   : > { %v995_v23 = vpop.f32.mrf.mxu1 }
 0x2f6   : > { %v996_v24 = vadd.f32 %v2094_v2, %v995_v23  ;;  %v1005_v25 = vmul.f32 %v1001_v22, %v1001_v22 }
 0x2f8   : > { %v2192_v26 = vpack.c.bf16 %v1001_v22, %v996_v24  ;;  %1008 = vadd.xlane.f32.xlu0 %v1005_v25  ;;  %v1004_v27 = vmul.f32 %v996_v24, %v996_v24 }
 0x2fa   : > { %2193 = vst [vmem:[#allocation2] sm:$0xff] %v2192_v26   ;;  %1006 = vadd.xlane.f32.xlu1 %v1004_v27 }
 0x324   : > { %v2550_v42 = vpop.f32.mrf.mxu1 }
 0x325   : > { %v1482_v46 = vadd.f32 %v2550_v42, %v1289_v43 }
 0x326   : > { %v1476_v45 = vpop.f32.mrf.mxu1 }
 0x327   : > { %v1477_v47 = vadd.f32 %v1476_v45, %v1284_v44  ;;  %v1556_v52 = vmul.f32 %v1482_v46, %v1482_v46 }
 0x328   : > { %v2553_v48 = vpop.f32.mrf.mxu1 }
 0x329   : > { %v1555_v49 = vmul.f32 %v1477_v47, %v1477_v47  ;;  %v2197_v50 = vpack.c.bf16 %v1482_v46, %v1477_v47  ;;  %v1492_v53 = vadd.f32 %v2553_v48, %v1299_v40 }
 0x32a   : > { %v1486_v51 = vpop.f32.mrf.mxu1 }
 0x32b   : > { %2198 = vst [vmem:[#allocation4] sm:$0xff] %v2197_v50   ;;  %v1487_v54 = vadd.f32 %v1486_v51, %v1294_v41  ;;  %v1571_v56 = vadd.f32 %v1556_v52, %v1555_v49  ;;  %v1558_v62 = vmul.f32 %v1492_v53, %v1492_v53 }
 0x32c   : > { %v2556_v55 = vpop.f32.mrf.mxu1 }
 0x32d   : > { %v1557_v57 = vmul.f32 %v1487_v54, %v1487_v54  ;;  %v2202_v58 = vpack.c.bf16 %v1492_v53, %v1487_v54  ;;  %v1502_v1 = vadd.f32 %v2556_v55, %v1309_v38 }
 0x32e   : > { %v1496_v60 = vpop.f32.mrf.mxu1 }
 0x32f   : > { %v1572_v63 = vadd.f32 %v1571_v56, %v1557_v57  ;;  %2239 = vst [vmem:[#allocation4 + $0x8] sm:$0xff] %v2202_v58   ;;  %v1497_v3 = vadd.f32 %v1496_v60, %v1304_v39  ;;  %v1560_v9 = vmul.f32 %v1502_v1, %v1502_v1 }
 0x330   : > { %v2559_v4 = vpop.f32.mrf.mxu1 }
 0x331   : > { %v1559_v5 = vmul.f32 %v1497_v3, %v1497_v3  ;;  %v1573_v6 = vadd.f32 %v1572_v63, %v1558_v62  ;;  %v2207_v7 = vpack.c.bf16 %v1502_v1, %v1497_v3  ;;  %v1512_v11 = vadd.f32 %v2559_v4, %v1319_v36 }
 0x332   : > { %v1506_v8 = vpop.f32.mrf.mxu1 }
 0x333   : > { %v1574_v10 = vadd.f32 %v1573_v6, %v1559_v5  ;;  %2240 = vst [vmem:[#allocation4 + $0x10] sm:$0xff] %v2207_v7   ;;  %v1507_v12 = vadd.f32 %v1506_v8, %v1314_v37  ;;  %v1562_v59 = vmul.f32 %v1512_v11, %v1512_v11  ;;  %v2715_v6 = vld [vmem:[#allocation4] sm:$0xff]   ;;  %v2716_v7 = vld [vmem:[#allocation2] sm:$0xff]  }
 0x334   : > { %v2562_v13 = vpop.f32.mrf.mxu1 }
 0x335   : > { %v1561_v14 = vmul.f32 %v1507_v12, %v1507_v12  ;;  %v1575_v15 = vadd.f32 %v1574_v10, %v1560_v9  ;;  %v2212_v16 = vpack.c.bf16 %v1512_v11, %v1507_v12  ;;  %v1522_v19 = vadd.f32 %v2562_v13, %v1329_v34 }
 0x336   : > { %v1516_v18 = vpop.f32.mrf.mxu1  ;;  %v2714_v5 = vld [vmem:[#allocation4 + $0x8] sm:$0xff]  }
 0x337   : > { %v1576_v0 = vadd.f32 %v1575_v15, %v1561_v14  ;;  %2241 = vst [vmem:[#allocation4 + $0x18] sm:$0xff] %v2212_v16   ;;  %v1517_v61 = vadd.f32 %v1516_v18, %v1324_v35  ;;  %v1564_v25 = vmul.f32 %v1522_v19, %v1522_v19 }
 0x338   : > { %v2565_v2 = vpop.f32.mrf.mxu1 }
 0x339   : > { %v1563_v21 = vmul.f32 %v1517_v61, %v1517_v61  ;;  %v1577_v22 = vadd.f32 %v1576_v0, %v1562_v59  ;;  %v2217_v23 = vpack.c.bf16 %v1522_v19, %v1517_v61  ;;  %v1532_v27 = vadd.f32 %v2565_v2, %v1339_v32 }
 0x33a   : > { %v1526_v24 = vpop.f32.mrf.mxu1  ;;  %v2713_v4 = vld [vmem:[#allocation4 + $0x10] sm:$0xff]  }
 0x33b   : > { %v1578_v26 = vadd.f32 %v1577_v22, %v1563_v21  ;;  %2242 = vst [vmem:[#allocation4 + $0x20] sm:$0xff] %v2217_v23   ;;  %v1527_v36 = vadd.f32 %v1526_v24, %v1334_v33  ;;  %v1566_v42 = vmul.f32 %v1532_v27, %v1532_v27 }
 0x33c   : > { %v2568_v37 = vpop.f32.mrf.mxu1 }
 0x33d   : > { %v1565_v38 = vmul.f32 %v1527_v36, %v1527_v36  ;;  %v1579_v39 = vadd.f32 %v1578_v26, %v1564_v25  ;;  %v2222_v40 = vpack.c.bf16 %v1532_v27, %v1527_v36  ;;  %v1542_v34 = vadd.f32 %v2568_v37, %v3621_v30 }
 0x33e   : > { %v1536_v41 = vpop.f32.mrf.mxu1  ;;  %v2712_v3 = vld [vmem:[#allocation4 + $0x18] sm:$0xff]  }
 0x33f   : > { %v1580_v43 = vadd.f32 %v1579_v39, %v1565_v38  ;;  %2243 = vst [vmem:[#allocation4 + $0x28] sm:$0xff] %v2222_v40   ;;  %v1537_v35 = vadd.f32 %v1536_v41, %v3623_v31  ;;  %v1568_v49 = vmul.f32 %v1542_v34, %v1542_v34 }
 0x340   : > { %v2571_v44 = vpop.f32.mrf.mxu1 }
 0x341   : > { %v1567_v45 = vmul.f32 %v1537_v35, %v1537_v35  ;;  %v1581_v46 = vadd.f32 %v1580_v43, %v1566_v42  ;;  %v2227_v47 = vpack.c.bf16 %v1542_v34, %v1537_v35  ;;  %v1552_v33 = vadd.f32 %v2571_v44, %v3617_v28 }
 0x342   : > { %v1546_v48 = vpop.f32.mrf.mxu1  ;;  %v2711_v1 = vld [vmem:[#allocation4 + $0x20] sm:$0xff]  }
 0x343   : > { %v1582_v32 = vadd.f32 %v1581_v46, %v1567_v45  ;;  %2244 = vst [vmem:[#allocation4 + $0x30] sm:$0xff] %v2227_v47   ;;  %v1547_v50 = vadd.f32 %v1546_v48, %v3619_v29  ;;  %v1570_v54 = vmul.f32 %v1552_v33, %v1552_v33 }
 0x345   : > { %v1569_v51 = vmul.f32 %v1547_v50, %v1547_v50  ;;  %v1583_v52 = vadd.f32 %v1582_v32, %v1568_v49  ;;  %v2232_v53 = vpack.c.bf16 %v1552_v33, %v1547_v50 }
 0x346   : > { %v2710_v29 = vld [vmem:[#allocation4 + $0x28] sm:$0xff]  }
 0x347   : > { %v1584_v55 = vadd.f32 %v1583_v52, %v1569_v51  ;;  %2245 = vst [vmem:[#allocation4 + $0x38] sm:$0xff] %v2232_v53  }
 0x349   : > { %v1585_v30 = vadd.f32 %v1584_v55, %v1570_v54 }
 0x34a   : > { %v2709_v62 = vld [vmem:[#allocation4 + $0x30] sm:$0xff]  }
 0x34b   : > { %v1586_v31 = vrot.slane %v1585_v30, 4 }
 0x34d   : > { %v1587_v56 = vadd.f32 %v1586_v31, %v1585_v30 }
 0x34e   : > { %v2708_v57 = vld [vmem:[#allocation4 + $0x38] sm:$0xff]  }
 0x34f   : > { %v1588_v58 = vrot.slane %v1587_v56, 2  ;;  %2573 = vmatpush3.bf16.msra.mxu1 %v2708_v57 }
 0x350   : > { %2574 = vmatprep.subr.bf16.mxu1 %v2993_v20 }
 0x351   : > { %v1589_v60 = vadd.f32 %v1588_v58, %v1587_v56 }
 0x353   : > { %v1590_v63 = vrot.slane %v1589_v60, 1  ;;  %2575 = vmatpush3.bf16.msra.mxu1 %v2709_v62 }
 0x354   : > { %2576 = vmatprep.subr.bf16.mxu1 %v2993_v20 }
 0x355   : > { %v1591_v28 = vadd.f32 %v1590_v63, %v1589_v60 }
 0x357   : > { %1592 = vst [vmem:[#allocation5] sm:$0x1] %v1591_v28  ;;  %2577 = vmatpush3.bf16.msra.mxu1 %v2710_v29 }
 0x358   : > { %2578 = vmatprep.subr.bf16.mxu1 %v2993_v20 }
 0x35b   : > { %2579 = vmatpush3.bf16.msra.mxu1 %v2711_v1 }
 0x35c   : > { %2580 = vmatprep.subr.bf16.mxu1 %v2993_v20 }
 0x35e   : > { %v2154_v13 = vld [vmem:[#allocation5] ss:$0 sm:$0xff] }
 0x35f   : > { %2581 = vmatpush3.bf16.msra.mxu1 %v2712_v3 }
 0x360   : > { %2582 = vmatprep.subr.bf16.mxu1 %v2993_v20 }
 0x363   : > { %2583 = vmatpush3.bf16.msra.mxu1 %v2713_v4 }
 0x364   : > { %2584 = vmatprep.subr.bf16.mxu1 %v2993_v20 }
 0x367   : > { %2585 = vmatpush3.bf16.msra.mxu1 %v2714_v5 }
 0x368   : > { %2586 = vmatprep.subr.bf16.mxu1 %v2993_v20 }
 0x36b   : > { %2587 = vmatpush3.bf16.msra.mxu1 %v2715_v6 }
 0x36e   : > { %2589 = vmatmul.mubr.bf16.vlgmr.msra.gmra.mxu1 %v2716_v7 }
 0x381   : > { %v1009_v8 = vpop.xlane.xlu0 %1008 }
 0x382   : > { %1012 = vst.msk [vmem:[#allocation3 + $0x8] sm:$0xff] %vm1010_vm9, %v1009_v8 }
 0x383   : > { %v1007_v9 = vpop.xlane.xlu1 %1006 }
 0x384   : > { %1011 = vst.msk [vmem:[#allocation3] sm:$0xff] %vm1010_vm9, %v1007_v9 }
 0x389   : > { %v1793_v10 = vld [vmem:[#allocation3 + $0x8] sm:$0xff] }
 0x38a   : > { %1802 = vperm.xlu1 %2707, %v1793_v10  }
 0x38b   : > { %v1792_v11 = vld [vmem:[#allocation3] sm:$0xff] }
 0x38c   : > { %1797 = vperm.xlu0 %2706, %v1792_v11  }
 0x405   : > { %v1803_v20 = vpop.permute.xlu1 %1802 }
 0x406   : > { %v1812_v19 = vadd.f32 %v2154_v13, %v1803_v20 }
 0x407   : > { %v1798_v12 = vpop.permute.xlu0 %1797 }
 0x408   : > { %v1811_v15 = vadd.f32 %v2154_v13, %v1798_v12 }
 0x42e   : > { %v1784_v14 = vpop.f32.mrf.mxu1 }
 0x42f   : > { %v1813_v16 = vmul.f32 2.0, %v1784_v14 }
 0x430   : > { %v2590_v18 = vpop.f32.mrf.mxu1 }
 0x431   : > { %v1815_v59 = vsub.f32 %v1811_v15, %v1813_v16 }
 0x432   : > { %v1787_v0 = vpop.f32.mrf.mxu1 }
 0x433   : > { %v1814_v61 = vmul.f32 2.0, %v1787_v0  ;;  %v1817_v2 = vmax.f32 %v1815_v59, 0.0 }
 0x434   : > { %v2591_v21 = vpop.f32.mrf.mxu1 }
 0x435   : > { %v1816_v22 = vsub.f32 %v1812_v19, %v1814_v61  ;;  %v1819_v23 = vmul.f32 -0.0005, %v1817_v2 }
 0x437   : > { %v1826_v24 = vsel %vm1825_vm10, %v1819_v23, -1e+30  ;;  %1821 = vst [vmem:[%s568_s19] sm:$0xff] %v1819_v23  ;;  %v1818_v25 = vmax.f32 %v1816_v22, 0.0 }
 0x438   : > { %1828 = vmax.xlane.f32.xlu1 %v1826_v24 }
 0x439   : > { %v1820_v26 = vmul.f32 -0.0005, %v1818_v25 }
 0x43b   : > { %v1827_v27 = vsel %vm1825_vm10, %v1820_v26, -1e+30  ;;  %1822 = vst [vmem:[%s568_s19 + $0x8] sm:$0xff] %v1820_v26 }
 0x43c   : > { %1830 = vmax.xlane.f32.xlu0 %v1827_v27 }
 0x4c1   : > { %v1829_v36 = vpop.xlane.xlu1 %1828 }
 0x4c2   : > { %v1832_v37 = vsub.f32 %v1826_v24, %v1829_v36 }
 0x4c4   : > { %v1834_v38 = vmul.f32 1.442695, %v1832_v37 }
 0x4c5   : > { %v1831_v39 = vpop.xlane.xlu0 %1830 }
 0x4c6   : > { %2717 = vpow2.f32 %v1834_v38  ;;  %v1833_v17 = vsub.f32 %v1827_v27, %v1831_v39 }
 0x4c8   : > { %v1836_v40 = vmul.f32 1.442695, %v1833_v17 }
 0x4ca   : > { %2719 = vpow2.f32 %v1836_v40 }
 0x4d3   : > { %v2718_v41 = vpop.eup %2717 }
 0x4d4   : > { %1838 = vadd.xlane.f32.xlu0 %v2718_v41 }
 0x4d7   : > { %v2720_v42 = vpop.eup %2719 }
 0x4d8   : > { %1840 = vadd.xlane.f32.xlu1 %v2720_v42 }
 0x4d9   : > { %2872 = shalt.err (!%p2869_p9)
}
 0x4da   : > { %s2873_s18 = scalar_lea.hbm %s3645_s21, 256  ;;  %s2877_s14 = scalar_lea.hbm %s3789_s22, 512 }
 0x4db   : > { %p2874_p0 = scmp.ne.s32.totalorder %s3645_s21, %s2873_s18  ;;  %p2878_p5 = scmp.lt.s32.totalorder %s3645_s21, %s3789_s22 }
 0x4dc   : > { %p2879_p3 = scmp.lt.s32.totalorder %s2877_s14, %s2873_s18 }
 0x4dd   : > { %p2875_p8 = pnand %p2874_p0, %p3176_p13 }
 0x4de   : > { %p2880_p4 = por %p2879_p3, %p2878_p5 }
 0x4df   : > { %p2876_p2 = pneg %p2875_p8 }
 0x4e1   : > { %p2881_p11 = pnand %p2880_p4, %p2876_p2 }
 0x4e3   : > { %2884 = shalt.err (!%p2881_p11)
}
 0x4e4   : > { %s2996_s27 = smov 128   ;;  %s2997_s19 = smov 8  }
 0x4e5   : > { %2609 = dma.vmem_to_hbm [thread:$0]  (%p3176_p13), %s3639_s6, 256, %s3645_s21, %s1862_s23, %s2996_s27, %s2996_s27, %s2997_s19  }
 0x4e6   : > { %s2088_s8 = sshll.u32 %s3230_s0, 3  ;;  %s2187_s28 = sshll.u32 %s3787_s17, 7 }
 0x4e7   : > { %s561_s30 = scalar_lea.vmem [#allocation15], %s2088_s8  ;;  %s3790_s24 = sld [smem:[#allocation37_spill]] }
 0x4e8   : > { %s1877_s12 = sshll.u32 %s561_s30, 4  ;;  %s1857_s6 = scalar_lea.sflag [#allocation8], %s3230_s0  ;;  %s3677_s12 = int_to_ptr.vmem [resolvable:$true] %s1877_s12 }
 0x4e9   : > { %s2885_s21 = scalar_lea.vmem %s3677_s12, 128  ;;  %s2998_s17 = smov [#allocation15]  }
 0x4ea   : > { %p2886_p10 = scmp.ne.s32.totalorder %s3677_s12, %s2885_s21  ;;  %s2889_s23 = sshll.u32 %s2998_s17, 4  ;;  %s2890_s23 = int_to_ptr.vmem [resolvable:$false] %s2889_s23 }
 0x4eb   : > { %s2891_s25 = scalar_lea.vmem %s2890_s23, 256  ;;  %p2892_p12 = scmp.lt.s32.totalorder %s3677_s12, %s2890_s23 }
 0x4ec   : > { %p2887_p7 = pnand %p2886_p10, %p3176_p13  ;;  %p2893_p9 = scmp.lt.s32.totalorder %s2891_s25, %s2885_s21 }
 0x4ed   : > { %s3675_s18 = scalar_lea.hbm %s3790_s24, %s2187_s28 }
 0x4ee   : > { %p2888_p1 = pneg %p2887_p7  ;;  %p2894_p0 = por %p2893_p9, %p2892_p12 }
 0x4f0   : > { %p2895_p8 = pnand %p2894_p0, %p2888_p1 }
 0x55d   : > { %v1839_v43 = vpop.xlane.xlu0 %1838 }
 0x55e   : > { %2721 = vrcp.f32 %v1839_v43 }
 0x561   : > { %v1841_v34 = vpop.xlane.xlu1 %1840 }
 0x562   : > { %2723 = vrcp.f32 %v1841_v34 }
 0x56b   : > { %v2722_v35 = vpop.eup %2721 }
 0x56c   : > { %v1844_v45 = vmul.f32 %v2722_v35, %v2718_v41 }
 0x56f   : > { %v2724_v44 = vpop.eup %2723 }
 0x570   : > { %v1845_v46 = vmul.f32 %v2724_v44, %v2720_v42 }
 0x572   : > { %v2237_v47 = vpack.c.bf16 %v1845_v46, %v1844_v45 }
 0x574   : > { %2238 = vst [vmem:[%s561_s30] sm:$0xff] %v2237_v47  }
 0x575   : > { %2898 = shalt.err (!%p2895_p8)
}
 0x576   : > { %s2899_s13 = scalar_lea.hbm %s3675_s18, 128  ;;  %s2903_s20 = scalar_lea.hbm %s3790_s24, 256 }
 0x577   : > { %p2900_p2 = scmp.ne.s32.totalorder %s3675_s18, %s2899_s13  ;;  %p2904_p4 = scmp.lt.s32.totalorder %s3675_s18, %s3790_s24 }
 0x578   : > { %p2905_p11 = scmp.lt.s32.totalorder %s2903_s20, %s2899_s13 }
 0x579   : > { %p2901_p5 = pnand %p2900_p2, %p3176_p13 }
 0x57a   : > { %p2906_p10 = por %p2905_p11, %p2904_p4 }
 0x57b   : > { %p2902_p3 = pneg %p2901_p5 }
 0x57d   : > { %p2907_p7 = pnand %p2906_p10, %p2902_p3 }
 0x57f   : > { %2910 = shalt.err (!%p2907_p7)
}
 0x580   : > { %s2999_s8 = smov 64   ;;  %s3000_s28 = smov 4  }
 0x581   : > { %2608 = dma.vmem_to_hbm [thread:$0]  (%p3176_p13), %s3677_s12, 128, %s3675_s18, %s1857_s6, %s2999_s8, %s2999_s8, %s3000_s28  }
 0x582 PF: > { %s3791_s30 = sld [smem:[#allocation24_spill]] }
 0x583   : > { %s3793_s15 = sld [smem:[#allocation27_spill]] }
 0x588   : > { %s1910_s21 = sand.u32 1, %s3791_s30  }
 0x589   : > { %p3794_p1 = scmp.ge.s32.totalorder %s3793_s15, 2  ;;  %s1911_s17 = scalar_lea.sflag [#allocation8], %s1910_s21 }
 0x58b   : > { %p2630_p12 = pnand %p3794_p1, %p3116_p6 }
 0x58d   : > { %p2631_p9 = pneg %p2630_p12 }
 0x58f   : > { %2952 = dma.done.wait (%p2631_p9), %s1911_s17, 128  }
 0x590   : > { %2954 = vsyncadd (%p2631_p9), %s1911_s17, 4294967168  ;;  %s1920_s23 = scalar_lea.sflag [#allocation17], %s1910_s21 }
 0x591   : > { %2956 = dma.done.wait (%p2631_p9), %s1920_s23, 256  }
 0x592   : > { %2958 = vsyncadd (%p2631_p9), %s1920_s23, 4294967040  ;;  %s37_s30 = sadd.s32 1, %s3793_s15   ;;  %s3795_s0 = sld [smem:[#allocation25_spill]] }
 0x593   : > { %p34_p0 = scmp.ge.s32.totalorder %s37_s30, 4   ;;  %s3796_s27 = sld [smem:[#allocation31_spill]] }
 0x594   : > { %s3797_s7 = sld [smem:[#allocation30_spill]]  ;;  %s3798_s25 = smov %s2965_s26 }
 0x595   : > { %s3800_s28 = smov %s2977_s29 }
 0x596   :  { %36 = sbr.rel (!%p34_p0) target bundleno = 19 (0x13), region = 161 }
 0x598   : > { %s3799_s26 = smov %s3795_s0 }
 0x59a   : > { %s3801_s29 = smov %s3797_s7 }
 0x59b   :  { %1925 = vsyncpa [#allocation7], 1 }
 0x59c   :  { %1927 = vsyncpa [#allocation7 + $0x1], 1 }
 0x59d   :  { %1928 = vsyncpa [#allocation10], 1 }
 0x59e   :  { %1930 = vsyncpa [#allocation10 + $0x1], 1 }
 0x59f   :  { %1931 = vsyncpa [#allocation13], 1 }
 0x5a0   :  { %1932 = vsyncpa [#allocation8], 1 }
 0x5a1   :  { %1934 = vsyncpa [#allocation8 + $0x1], 1 }
 0x5a2   :  { %1935 = vsyncpa [#allocation17], 1 }
 0x5a3   :  { %1937 = vsyncpa [#allocation17 + $0x1], 1 }

</bundles_post_ra>
